<compile_context>
chip_gen: v7x
topology: tpu7x:2x2x1
jax: 0.10.0
libtpu: 0.0.40
codegen_flags: <defaults>
</compile_context>

<pallas_src>
import functools

import jax
import jax.numpy as jnp
from jax.experimental import pallas as pl
from jax.experimental.pallas import tpu as pltpu


def _make_divisible(v, divisor, min_value=None):
    if min_value is None:
        min_value = divisor
    new_v = max(min_value, int(v + divisor / 2) // divisor * divisor)
    if new_v < 0.9 * v:
        new_v += divisor
    return new_v


def _round_up(n, m):
    return (n + m - 1) // m * m


# -----------------------------------------------------------------------------
# One-time probe: does pltpu.roll follow jnp.roll's direction convention?
#   +1: pltpu.roll(x, s, ax) == jnp.roll(x, s, ax)
#   -1: reversed convention
#    0: pltpu.roll unusable -> fall back to jnp.roll inside the kernel
# -----------------------------------------------------------------------------
_ROLL_MODE = None


def _roll_mode():
    global _ROLL_MODE
    if _ROLL_MODE is not None:
        return _ROLL_MODE
    try:
        def probe(x_ref, o_ref):
            o_ref[...] = pltpu.roll(x_ref[...], 3, 1)

        x = jnp.tile(jnp.arange(128, dtype=jnp.float32)[None, :], (8, 1))
        out = jax.block_until_ready(
            pl.pallas_call(
                probe, out_shape=jax.ShapeDtypeStruct((8, 128), jnp.float32))(x))
        if bool(jnp.array_equal(out, jnp.roll(x, 3, axis=1))):
            _ROLL_MODE = 1
        elif bool(jnp.array_equal(out, jnp.roll(x, -3, axis=1))):
            _ROLL_MODE = -1
        else:
            _ROLL_MODE = 0
    except Exception:
        _ROLL_MODE = 0
    return _ROLL_MODE


# -----------------------------------------------------------------------------
# Fused kernel: one batch element per grid step.
# Activations live as lane-dense (channels, pixels) 2-D tiles in VMEM/vregs.
# -----------------------------------------------------------------------------
def _inverted_residual_kernel(*refs, K, stride, H, W, Hout, Wout, Pout, Poutpad,
                              use_se, use_hs, identity, center_mask,
                              matmul_dtype, roll_mode):
    it = iter(refs)
    x_ref = next(it)
    idx_ref = next(it)
    wexp_ref = next(it)
    bexp_ref = next(it)
    wdw_ref = next(it)
    bdw_ref = next(it)
    if use_se:
        wse1_ref = next(it)
        bse1_ref = next(it)
        wse2_ref = next(it)
        bse2_ref = next(it)
    if stride != 1:
        colsel_ref = next(it)
    wproj_ref = next(it)
    bproj_ref = next(it)
    o_ref = next(it)

    f32 = jnp.float32
    pad = (K - 1) // 2
    hidden = wdw_ref.shape[0]
    Ppad = x_ref.shape[-1]

    def mm(a, b):
        # MXU matmul; weights arrive pre-cast to matmul_dtype, so the cast below
        # only does real work on activations (no-op on already-cast weights).
        return jnp.dot(a.astype(matmul_dtype), b.astype(matmul_dtype),
                       preferred_element_type=f32)

    def act(v):
        if use_hs:                                       # h_swish
            return v * (jnp.clip(v + 3.0, 0.0, 6.0) * (1.0 / 6.0))
        return jnp.maximum(v, 0.0)                       # ReLU

    def lane_roll(v, s):
        # result[:, p] = v[:, (p + s) % Ppad]  (cyclic; border masks make the
        # wrapped-in values irrelevant).
        if s == 0:
            return v
        if roll_mode == 1:                               # pltpu.roll == jnp.roll
            return pltpu.roll(v, (-s) % Ppad, 1)
        if roll_mode == -1:                              # reversed convention
            return pltpu.roll(v, s % Ppad, 1)
        return jnp.roll(v, -s, axis=1)                   # safe fallback

    x = x_ref[0].astype(f32)                             # (C, Ppad)

    # ---- 1x1 expand conv (+ folded BN) + activation --------------------------
    h = act(mm(wexp_ref[...], x) + bexp_ref[...])        # (hidden, Ppad)

    # ---- KxK depthwise conv (+ folded BN): XLU lane rolls + border masks -----
    idx = idx_ref[...]                                   # (2, Ppad)
    row = idx[0:1, :]                                    # pixel row index (-1e4 in pad lanes)
    col = idx[1:2, :]                                    # pixel col index
    wdw = wdw_ref[...].astype(f32)                       # (hidden, K*K)

    acc = None
    for kh in range(K):
        for kw in range(K):
            t = kh * K + kw
            di, dj = kh - pad, kw - pad
            s = di * W + dj                              # flattened pixel shift
            src = lane_roll(h, s)
            w_t = wdw[:, t:t + 1]                        # (hidden, 1)
            if di == 0 and dj == 0 and not center_mask:
                term = src * w_t                         # centre tap: mask is all-ones
            else:
                valid = ((row >= -di) & (row <= (H - 1) - di) &
                         (col >= -dj) & (col <= (W - 1) - dj))
                term = (src * valid.astype(f32)) * w_t
            acc = term if acc is None else acc + term    # first tap initialises acc

    # ---- stride > 1: exact subsample (per-row slice + tiny col-select matmul) -
    if stride != 1:
        cs = colsel_ref[...]                             # (W, Wout) 0/1, kept f32 (exact)
        pieces = []
        for ho in range(Hout):
            start = ho * stride * W
            blk = acc[:, start:start + W]                # (hidden, W) contiguous lanes
            pieces.append(jnp.dot(blk, cs, preferred_element_type=f32))
        if Poutpad > Pout:
            pieces.append(jnp.zeros((hidden, Poutpad - Pout), f32))
        acc = jnp.concatenate(pieces, axis=1)            # (hidden, Poutpad)

    d = acc + bdw_ref[...]                               # folded BN bias

    # ---- squeeze-and-excite ----------------------------------------------------
    if use_se:
        # Padded lanes of `acc` are exactly zero, so sum / true-pixel-count is the
        # exact spatial mean of d (= mean(acc) + bdw).
        s_vec = (jnp.sum(acc, axis=1, keepdims=True) * (1.0 / Pout)
                 + bdw_ref[...])                         # (hidden, 1)
        z = jnp.maximum(mm(wse1_ref[...], s_vec) + bse1_ref[...], 0.0)
        g = mm(wse2_ref[...], z) + bse2_ref[...]
        g = jnp.clip(g + 3.0, 0.0, 6.0) * (1.0 / 6.0)    # h_sigmoid
        d = d * g                                        # broadcast over pixels

    d = act(d)

    # ---- 1x1 project conv (+ folded BN) + residual -----------------------------
    y = mm(wproj_ref[...], d) + bproj_ref[...]           # (C_out, Poutpad)
    if identity:                                         # static gate; f32 add
        y = y + x
    o_ref[0] = y.astype(o_ref.dtype)


# -----------------------------------------------------------------------------
# Wrapper
# -----------------------------------------------------------------------------
def _vmem_limit(C, C_out, hidden, Ppad, Poutpad):
    f32b = 4
    live = Ppad * (6 * hidden + 2 * C) * f32b + Poutpad * (2 * hidden + 2 * C_out) * f32b
    io = (C * Ppad + C_out * Poutpad) * f32b * 2          # double-buffered I/O blocks
    limit = int(1.5 * (live + io)) + (8 << 20)
    limit = max(limit, 32 << 20)
    limit = min(limit, 96 << 20)
    try:
        cap = pltpu.get_tpu_info().vmem_capacity_bytes    # 64 MiB on v7x, 128 MiB v5e/v6e
        limit = min(limit, int(cap) * 3 // 4)
    except Exception:
        pass
    return int(limit)


def inverted_residual(x, params, *, kernel_size=3, stride=1, use_se=True,
                      use_hs=True, eps=1e-5, matmul_dtype=jnp.float32):
    """x: (B, C, H, W) NCHW, like the PyTorch module (expansion != 1 branch)."""
    assert stride in (1, 2)
    B, C, H, W = x.shape
    K = kernel_size
    pad = (K - 1) // 2
    hidden = params["w_exp"].shape[0]
    C_out = params["w_proj"].shape[0]
    Hout = (H + 2 * pad - K) // stride + 1
    Wout = (W + 2 * pad - K) // stride + 1
    P, Pout = H * W, Hout * Wout
    Ppad = max(_round_up(P, 128), 128)                    # lane-dense pixel count
    Poutpad = max(_round_up(Pout, 128), 128)
    identity = (stride == 1) and (C == C_out)
    f32 = jnp.float32

    # Fold inference BatchNorm into the (bias-free) conv weights.
    def fold(w2d, q):
        scale = (q["gamma"] / jnp.sqrt(q["var"] + eps)).astype(f32)
        w = w2d.astype(f32) * scale[:, None]
        b = (q["beta"] - q["mean"] * scale).astype(f32)[:, None]
        return w, b

    wexp, bexp = fold(params["w_exp"].reshape(hidden, C), params["bn1"])
    wdw, bdw = fold(params["w_dw"].reshape(hidden, K * K), params["bn2"])
    wproj, bproj = fold(params["w_proj"].reshape(C_out, hidden), params["bn3"])
    # MXU weights pre-cast on the host (bf16 in production); depthwise taps and
    # all biases stay f32 on the VPU / accumulation path.
    wexp = wexp.astype(matmul_dtype)
    wproj = wproj.astype(matmul_dtype)

    # (2, Ppad) pixel row/col index table (padded lanes = -1e4 so every tap mask
    # evaluates to 0 there).  Replaces the old (K*K, P) f32 mask slab.
    rowidx = jnp.repeat(jnp.arange(H, dtype=f32), W)
    colidx = jnp.tile(jnp.arange(W, dtype=f32), H)
    idx = jnp.stack([rowidx, colidx])                     # (2, P)
    if Ppad > P:
        idx = jnp.concatenate([idx, jnp.full((2, Ppad - P), -1e4, f32)], axis=1)

    x2 = x.reshape(B, C, P)                               # free metadata reshape
    if Ppad > P:                                          # lane-dense padding
        x2 = jnp.pad(x2, ((0, 0), (0, 0), (0, Ppad - P)))

    operands = [x2, idx, wexp, bexp, wdw, bdw]
    if use_se:
        operands += [params["w_se1"].astype(matmul_dtype),
                     params["b_se1"].astype(f32)[:, None],
                     params["w_se2"].astype(matmul_dtype),
                     params["b_se2"].astype(f32)[:, None]]
    if stride != 1:
        colsel = (jnp.arange(W)[:, None] ==
                  (jnp.arange(Wout) * stride)[None, :]).astype(f32)   # (W, Wout)
        operands += [colsel]
    operands += [wproj, bproj]

    def full2(a):                                         # whole-array 2-D block
        return pl.BlockSpec(a.shape, lambda b: (0, 0))

    in_specs = ([pl.BlockSpec((1, C, Ppad), lambda b: (b, 0, 0))]
                + [full2(a) for a in operands[1:]])

    # Apply the centre-tap mask only when padded lanes must stay exactly zero
    # for the SE squeeze (stride-1 path with lane padding).
    center_mask = (Ppad > P) and (stride == 1) and use_se

    kernel = functools.partial(
        _inverted_residual_kernel, K=K, stride=stride, H=H, W=W, Hout=Hout,
        Wout=Wout, Pout=Pout, Poutpad=Poutpad, use_se=use_se, use_hs=use_hs,
        identity=identity, center_mask=center_mask, matmul_dtype=matmul_dtype,
        roll_mode=_roll_mode())

    out = pl.pallas_call(
        kernel,
        out_shape=jax.ShapeDtypeStruct((B, C_out, Poutpad), x.dtype),
        grid=(B,),
        in_specs=in_specs,
        out_specs=pl.BlockSpec((1, C_out, Poutpad), lambda b: (b, 0, 0)),
        compiler_params=pltpu.CompilerParams(
            dimension_semantics=("parallel",),
            vmem_limit_bytes=_vmem_limit(C, C_out, hidden, Ppad, Poutpad)),
    )(*operands)

    if Poutpad > Pout:
        out = out[:, :, :Pout]
    return out.reshape(B, C_out, Hout, Wout)              # free reshape


# -----------------------------------------------------------------------------
# Pure-JAX reference (mirrors the PyTorch forward, BN in inference mode)
# -----------------------------------------------------------------------------
def reference(x, p, *, kernel_size=3, stride=1, use_se=True, use_hs=True, eps=1e-5):
    K = kernel_size
    pad = (K - 1) // 2
    B, C, H, W = x.shape
    hidden = p["w_exp"].shape[0]
    C_out = p["w_proj"].shape[0]
    dn = ("NCHW", "OIHW", "NCHW")

    def bn(y, q):
        scale = q["gamma"] / jnp.sqrt(q["var"] + eps)
        shift = q["beta"] - q["mean"] * scale
        return y * scale[None, :, None, None] + shift[None, :, None, None]

    def act(y):
        return y * (jnp.clip(y + 3.0, 0.0, 6.0) / 6.0) if use_hs else jnp.maximum(y, 0.0)

    h = jax.lax.conv_general_dilated(x, p["w_exp"], (1, 1), "VALID", dimension_numbers=dn)
    h = act(bn(h, p["bn1"]))
    d = jax.lax.conv_general_dilated(h, p["w_dw"], (stride, stride),
                                     [(pad, pad), (pad, pad)],
                                     feature_group_count=hidden, dimension_numbers=dn)
    d = bn(d, p["bn2"])
    if use_se:
        s = d.mean(axis=(2, 3))
        z = jnp.maximum(s @ p["w_se1"].T + p["b_se1"], 0.0)
        g = z @ p["w_se2"].T + p["b_se2"]
        g = jnp.clip(g + 3.0, 0.0, 6.0) / 6.0
        d = d * g[:, :, None, None]
    d = act(d)
    y = jax.lax.conv_general_dilated(d, p["w_proj"], (1, 1), "VALID", dimension_numbers=dn)
    y = bn(y, p["bn3"])
    if stride == 1 and C == C_out:
        y = y + x
    return y


if __name__ == "__main__":
    def bn_params(k, n):
        k1, k2, k3, k4 = jax.random.split(k, 4)
        return dict(gamma=1.0 + 0.1 * jax.random.normal(k1, (n,)),
                    beta=0.1 * jax.random.normal(k2, (n,)),
                    mean=0.1 * jax.random.normal(k3, (n,)),
                    var=jnp.abs(jax.random.normal(k4, (n,))) + 0.5)

    def make_params(key, C, C_out, K, expansion):
        hidden = C * expansion
        se_mid = _make_divisible(hidden // 4, 8)
        ks = jax.random.split(key, 10)
        return dict(
            w_exp=0.3 * jax.random.normal(ks[0], (hidden, C, 1, 1), jnp.float32),
            bn1=bn_params(ks[1], hidden),
            w_dw=0.3 * jax.random.normal(ks[2], (hidden, 1, K, K), jnp.float32),
            bn2=bn_params(ks[3], hidden),
            w_se1=0.3 * jax.random.normal(ks[4], (se_mid, hidden), jnp.float32),
            b_se1=0.1 * jax.random.normal(ks[5], (se_mid,), jnp.float32),
            w_se2=0.3 * jax.random.normal(ks[6], (hidden, se_mid), jnp.float32),
            b_se2=0.1 * jax.random.normal(ks[7], (hidden,), jnp.float32),
            w_proj=0.3 * jax.random.normal(ks[8], (C_out, hidden, 1, 1), jnp.float32),
            bn3=bn_params(ks[9], C_out),
        )

    key = jax.random.PRNGKey(0)
    cases = [
        # (name,               B, C, C_out, H,  W,  K, expansion, stride, use_se, use_hs)
        ("s1_identity_16x16",  2, 4, 4,     16, 16, 3, 4,         1,      True,   True),
        ("s2_16x16",           2, 4, 8,     16, 16, 3, 4,         2,      True,   True),
        ("s1_padded_12x12",    2, 4, 4,     12, 12, 3, 4,         1,      True,   False),
    ]
    for i, (name, B, C, C_out, H, W, K, exp_f, stride, use_se, use_hs) in enumerate(cases):
        kx, kp = jax.random.split(jax.random.fold_in(key, i))
        x = jax.random.normal(kx, (B, C, H, W), jnp.float32)
        params = make_params(kp, C, C_out, K, exp_f)

        out = inverted_residual(x, params, kernel_size=K, stride=stride,
                                use_se=use_se, use_hs=use_hs)
        out = jax.block_until_ready(out)

        ref = reference(x, params, kernel_size=K, stride=stride,
                        use_se=use_se, use_hs=use_hs)
        if out.shape != ref.shape:
            raise SystemExit(f"{name}: shape mismatch {out.shape} vs {ref.shape}")
        if not jnp.allclose(out, ref, atol=1e-3, rtol=1e-3):
            err = float(jnp.max(jnp.abs(out - ref)))
            raise SystemExit(f"{name}: mismatch vs reference (max abs err {err:.3e})")

    print("KERNEL_OK")
</pallas_src>

<mosaic_0001>
module attributes {stable_mosaic.version = 11 : i64} {
  func.func @probe(%arg0: memref<8x128xf32, #tpu.memory_space<vmem>>, %arg1: memref<8x128xf32, #tpu.memory_space<vmem>>) attributes {dimension_semantics = [], scalar_prefetch = 0 : i64, scratch_operands = 0 : i64, tpu.core_type = #tpu.core_type<tc>} {
    %c0 = arith.constant 0 : index
    %c0_0 = arith.constant 0 : index
    %0 = vector.load %arg0[%c0, %c0_0] : memref<8x128xf32, #tpu.memory_space<vmem>>, vector<8x128xf32>
    %c3_i32 = arith.constant 3 : i32
    %1 = tpu.dynamic_rotate %0 by %c3_i32 dim 1 : vector<8x128xf32>, i32 -> vector<8x128xf32>
    %c0_1 = arith.constant 0 : index
    %c0_2 = arith.constant 0 : index
    %2 = vector.load %arg1[%c0_1, %c0_2] : memref<8x128xf32, #tpu.memory_space<vmem>>, vector<8x128xf32>
    tpu.vector_store %arg1[%c0_1, %c0_2], %1 {strides = array<i32>} : memref<8x128xf32, #tpu.memory_space<vmem>>, vector<8x128xf32>,
    return
  }
}

module attributes {stable_mosaic.version = 11 : i64} {
  func.func @_inverted_residual_kernel(%arg0: i32, %arg1: memref<1x4x256xf32, #tpu.memory_space<vmem>>, %arg2: memref<2x256xf32, #tpu.memory_space<vmem>>, %arg3: memref<16x4xf32, #tpu.memory_space<vmem>>, %arg4: memref<16x1xf32, #tpu.memory_space<vmem>>, %arg5: memref<16x9xf32, #tpu.memory_space<vmem>>, %arg6: memref<16x1xf32, #tpu.memory_space<vmem>>, %arg7: memref<8x16xf32, #tpu.memory_space<vmem>>, %arg8: memref<8x1xf32, #tpu.memory_space<vmem>>, %arg9: memref<16x8xf32, #tpu.memory_space<vmem>>, %arg10: memref<16x1xf32, #tpu.memory_space<vmem>>, %arg11: memref<4x16xf32, #tpu.memory_space<vmem>>, %arg12: memref<4x1xf32, #tpu.memory_space<vmem>>, %arg13: memref<1x4x256xf32, #tpu.memory_space<vmem>>) attributes {dimension_semantics = [#tpu.dimension_semantics<parallel>], iteration_bounds = array<i64: 2>, scalar_prefetch = 0 : i64, scratch_operands = 0 : i64, tpu.core_type = #tpu.core_type<tc>, window_params = [{transform_indices = @transform_0, window_bounds = array<i64: 1, 4, 256>}, {pipeline_mode = #tpu.pipeline_mode<synchronous>, transform_indices = @transform_1, window_bounds = array<i64: 2, 256>}, {pipeline_mode = #tpu.pipeline_mode<synchronous>, transform_indices = @transform_2, window_bounds = array<i64: 16, 4>}, {pipeline_mode = #tpu.pipeline_mode<synchronous>, transform_indices = @transform_3, window_bounds = array<i64: 16, 1>}, {pipeline_mode = #tpu.pipeline_mode<synchronous>, transform_indices = @transform_4, window_bounds = array<i64: 16, 9>}, {pipeline_mode = #tpu.pipeline_mode<synchronous>, transform_indices = @transform_5, window_bounds = array<i64: 16, 1>}, {pipeline_mode = #tpu.pipeline_mode<synchronous>, transform_indices = @transform_6, window_bounds = array<i64: 8, 16>}, {pipeline_mode = #tpu.pipeline_mode<synchronous>, transform_indices = @transform_7, window_bounds = array<i64: 8, 1>}, {pipeline_mode = #tpu.pipeline_mode<synchronous>, transform_indices = @transform_8, window_bounds = array<i64: 16, 8>}, {pipeline_mode = #tpu.pipeline_mode<synchronous>, transform_indices = @transform_9, window_bounds = array<i64: 16, 1>}, {pipeline_mode = #tpu.pipeline_mode<synchronous>, transform_indices = @transform_10, window_bounds = array<i64: 4, 16>}, {pipeline_mode = #tpu.pipeline_mode<synchronous>, transform_indices = @transform_11, window_bounds = array<i64: 4, 1>}, {transform_indices = @transform_12, window_bounds = array<i64: 1, 4, 256>}]} {
    %c0 = arith.constant 0 : index
    %c0_0 = arith.constant 0 : index
    %c0_1 = arith.constant 0 : index
    %0 = vector.load %arg1[%c0, %c0_0, %c0_1] : memref<1x4x256xf32, #tpu.memory_space<vmem>>, vector<1x4x256xf32>
    %1 = vector.shape_cast %0 : vector<1x4x256xf32> to vector<4x256xf32>
    %c0_2 = arith.constant 0 : index
    %c0_3 = arith.constant 0 : index
    %2 = vector.load %arg3[%c0_2, %c0_3] : memref<16x4xf32, #tpu.memory_space<vmem>>, vector<16x4xf32>
    %cst = arith.constant dense<0.000000e+00> : vector<16x256xf32>
    %3 = tpu.matmul %2, %1, %cst {dimension_numbers = #tpu.dot_dimension_numbers<[1], [0], [0], [1], [0, 0, 1, 1], [], []>} : vector<16x4xf32>, vector<4x256xf32>, vector<16x256xf32> -> vector<16x256xf32>
    %c0_4 = arith.constant 0 : index
    %c0_5 = arith.constant 0 : index
    %4 = vector.load %arg4[%c0_4, %c0_5] : memref<16x1xf32, #tpu.memory_space<vmem>>, vector<16x1xf32>
    %5 = vector.broadcast %4 : vector<16x1xf32> to vector<16x256xf32>
    %6 = arith.addf %3, %5 : vector<16x256xf32>
    %cst_6 = arith.constant 3.000000e+00 : f32
    %7 = vector.broadcast %cst_6 : f32 to vector<16x256xf32>
    %8 = arith.addf %6, %7 : vector<16x256xf32>
    %cst_7 = arith.constant 0.000000e+00 : f32
    %cst_8 = arith.constant 6.000000e+00 : f32
    %9 = vector.broadcast %cst_7 : f32 to vector<16x256xf32>
    %10 = arith.maximumf %9, %8 : vector<16x256xf32>
    %11 = vector.broadcast %cst_8 : f32 to vector<16x256xf32>
    %12 = arith.minimumf %11, %10 : vector<16x256xf32>
    %cst_9 = arith.constant 0.166666672 : f32
    %13 = vector.broadcast %cst_9 : f32 to vector<16x256xf32>
    %14 = arith.mulf %12, %13 : vector<16x256xf32>
    %15 = arith.mulf %6, %14 : vector<16x256xf32>
    %c0_10 = arith.constant 0 : index
    %c0_11 = arith.constant 0 : index
    %16 = vector.load %arg2[%c0_10, %c0_11] : memref<2x256xf32, #tpu.memory_space<vmem>>, vector<2x256xf32>
    %17 = vector.extract_strided_slice %16 {offsets = [0, 0], sizes = [1, 256], strides = [1, 1]} : vector<2x256xf32> to vector<1x256xf32>
    %18 = vector.extract_strided_slice %16 {offsets = [1, 0], sizes = [1, 256], strides = [1, 1]} : vector<2x256xf32> to vector<1x256xf32>
    %c0_12 = arith.constant 0 : index
    %c0_13 = arith.constant 0 : index
    %19 = vector.load %arg5[%c0_12, %c0_13] : memref<16x9xf32, #tpu.memory_space<vmem>>, vector<16x9xf32>
    %20 = vector.extract_strided_slice %15 {offsets = [0, 239], sizes = [16, 17], strides = [1, 1]} : vector<16x256xf32> to vector<16x17xf32>
    %21 = vector.extract_strided_slice %15 {offsets = [0, 0], sizes = [16, 239], strides = [1, 1]} : vector<16x256xf32> to vector<16x239xf32>
    %22 = tpu.concatenate %20, %21 in 1 : vector<16x17xf32>, vector<16x239xf32> -> vector<16x256xf32>
    %23 = vector.extract_strided_slice %19 {offsets = [0, 0], sizes = [16, 1], strides = [1, 1]} : vector<16x9xf32> to vector<16x1xf32>
    %cst_14 = arith.constant 1.000000e+00 : f32
    %24 = vector.broadcast %cst_14 : f32 to vector<1x256xf32>
    %25 = arith.cmpf oge, %17, %24 : vector<1x256xf32>
    %cst_15 = arith.constant 1.600000e+01 : f32
    %26 = vector.broadcast %cst_15 : f32 to vector<1x256xf32>
    %27 = arith.cmpf ole, %17, %26 : vector<1x256xf32>
    %28 = arith.andi %25, %27 : vector<1x256xi1>
    %cst_16 = arith.constant 1.000000e+00 : f32
    %29 = vector.broadcast %cst_16 : f32 to vector<1x256xf32>
    %30 = arith.cmpf oge, %18, %29 : vector<1x256xf32>
    %31 = arith.andi %28, %30 : vector<1x256xi1>
    %cst_17 = arith.constant 1.600000e+01 : f32
    %32 = vector.broadcast %cst_17 : f32 to vector<1x256xf32>
    %33 = arith.cmpf ole, %18, %32 : vector<1x256xf32>
    %34 = arith.andi %31, %33 : vector<1x256xi1>
    %35 = arith.extui %34 : vector<1x256xi1> to vector<1x256xi32>
    %36 = arith.sitofp %35 : vector<1x256xi32> to vector<1x256xf32>
    %37 = vector.broadcast %36 : vector<1x256xf32> to vector<16x256xf32>
    %38 = arith.mulf %22, %37 : vector<16x256xf32>
    %39 = vector.broadcast %23 : vector<16x1xf32> to vector<16x256xf32>
    %40 = arith.mulf %38, %39 : vector<16x256xf32>
    %41 = vector.extract_strided_slice %15 {offsets = [0, 240], sizes = [16, 16], strides = [1, 1]} : vector<16x256xf32> to vector<16x16xf32>
    %42 = vector.extract_strided_slice %15 {offsets = [0, 0], sizes = [16, 240], strides = [1, 1]} : vector<16x256xf32> to vector<16x240xf32>
    %43 = tpu.concatenate %41, %42 in 1 : vector<16x16xf32>, vector<16x240xf32> -> vector<16x256xf32>
    %44 = vector.extract_strided_slice %19 {offsets = [0, 1], sizes = [16, 1], strides = [1, 1]} : vector<16x9xf32> to vector<16x1xf32>
    %cst_18 = arith.constant 1.000000e+00 : f32
    %45 = vector.broadcast %cst_18 : f32 to vector<1x256xf32>
    %46 = arith.cmpf oge, %17, %45 : vector<1x256xf32>
    %cst_19 = arith.constant 1.600000e+01 : f32
    %47 = vector.broadcast %cst_19 : f32 to vector<1x256xf32>
    %48 = arith.cmpf ole, %17, %47 : vector<1x256xf32>
    %49 = arith.andi %46, %48 : vector<1x256xi1>
    %cst_20 = arith.constant 0.000000e+00 : f32
    %50 = vector.broadcast %cst_20 : f32 to vector<1x256xf32>
    %51 = arith.cmpf oge, %18, %50 : vector<1x256xf32>
    %52 = arith.andi %49, %51 : vector<1x256xi1>
    %cst_21 = arith.constant 1.500000e+01 : f32
    %53 = vector.broadcast %cst_21 : f32 to vector<1x256xf32>
    %54 = arith.cmpf ole, %18, %53 : vector<1x256xf32>
    %55 = arith.andi %52, %54 : vector<1x256xi1>
    %56 = arith.extui %55 : vector<1x256xi1> to vector<1x256xi32>
    %57 = arith.sitofp %56 : vector<1x256xi32> to vector<1x256xf32>
    %58 = vector.broadcast %57 : vector<1x256xf32> to vector<16x256xf32>
    %59 = arith.mulf %43, %58 : vector<16x256xf32>
    %60 = vector.broadcast %44 : vector<16x1xf32> to vector<16x256xf32>
    %61 = arith.mulf %59, %60 : vector<16x256xf32>
    %62 = arith.addf %40, %61 : vector<16x256xf32>
    %63 = vector.extract_strided_slice %15 {offsets = [0, 241], sizes = [16, 15], strides = [1, 1]} : vector<16x256xf32> to vector<16x15xf32>
    %64 = vector.extract_strided_slice %15 {offsets = [0, 0], sizes = [16, 241], strides = [1, 1]} : vector<16x256xf32> to vector<16x241xf32>
    %65 = tpu.concatenate %63, %64 in 1 : vector<16x15xf32>, vector<16x241xf32> -> vector<16x256xf32>
    %66 = vector.extract_strided_slice %19 {offsets = [0, 2], sizes = [16, 1], strides = [1, 1]} : vector<16x9xf32> to vector<16x1xf32>
    %cst_22 = arith.constant 1.000000e+00 : f32
    %67 = vector.broadcast %cst_22 : f32 to vector<1x256xf32>
    %68 = arith.cmpf oge, %17, %67 : vector<1x256xf32>
    %cst_23 = arith.constant 1.600000e+01 : f32
    %69 = vector.broadcast %cst_23 : f32 to vector<1x256xf32>
    %70 = arith.cmpf ole, %17, %69 : vector<1x256xf32>
    %71 = arith.andi %68, %70 : vector<1x256xi1>
    %cst_24 = arith.constant -1.000000e+00 : f32
    %72 = vector.broadcast %cst_24 : f32 to vector<1x256xf32>
    %73 = arith.cmpf oge, %18, %72 : vector<1x256xf32>
    %74 = arith.andi %71, %73 : vector<1x256xi1>
    %cst_25 = arith.constant 1.400000e+01 : f32
    %75 = vector.broadcast %cst_25 : f32 to vector<1x256xf32>
    %76 = arith.cmpf ole, %18, %75 : vector<1x256xf32>
    %77 = arith.andi %74, %76 : vector<1x256xi1>
    %78 = arith.extui %77 : vector<1x256xi1> to vector<1x256xi32>
    %79 = arith.sitofp %78 : vector<1x256xi32> to vector<1x256xf32>
    %80 = vector.broadcast %79 : vector<1x256xf32> to vector<16x256xf32>
    %81 = arith.mulf %65, %80 : vector<16x256xf32>
    %82 = vector.broadcast %66 : vector<16x1xf32> to vector<16x256xf32>
    %83 = arith.mulf %81, %82 : vector<16x256xf32>
    %84 = arith.addf %62, %83 : vector<16x256xf32>
    %85 = vector.extract_strided_slice %15 {offsets = [0, 255], sizes = [16, 1], strides = [1, 1]} : vector<16x256xf32> to vector<16x1xf32>
    %86 = vector.extract_strided_slice %15 {offsets = [0, 0], sizes = [16, 255], strides = [1, 1]} : vector<16x256xf32> to vector<16x255xf32>
    %87 = tpu.concatenate %85, %86 in 1 : vector<16x1xf32>, vector<16x255xf32> -> vector<16x256xf32>
    %88 = vector.extract_strided_slice %19 {offsets = [0, 3], sizes = [16, 1], strides = [1, 1]} : vector<16x9xf32> to vector<16x1xf32>
    %cst_26 = arith.constant 0.000000e+00 : f32
    %89 = vector.broadcast %cst_26 : f32 to vector<1x256xf32>
    %90 = arith.cmpf oge, %17, %89 : vector<1x256xf32>
    %cst_27 = arith.constant 1.500000e+01 : f32
    %91 = vector.broadcast %cst_27 : f32 to vector<1x256xf32>
    %92 = arith.cmpf ole, %17, %91 : vector<1x256xf32>
    %93 = arith.andi %90, %92 : vector<1x256xi1>
    %cst_28 = arith.constant 1.000000e+00 : f32
    %94 = vector.broadcast %cst_28 : f32 to vector<1x256xf32>
    %95 = arith.cmpf oge, %18, %94 : vector<1x256xf32>
    %96 = arith.andi %93, %95 : vector<1x256xi1>
    %cst_29 = arith.constant 1.600000e+01 : f32
    %97 = vector.broadcast %cst_29 : f32 to vector<1x256xf32>
    %98 = arith.cmpf ole, %18, %97 : vector<1x256xf32>
    %99 = arith.andi %96, %98 : vector<1x256xi1>
    %100 = arith.extui %99 : vector<1x256xi1> to vector<1x256xi32>
    %101 = arith.sitofp %100 : vector<1x256xi32> to vector<1x256xf32>
    %102 = vector.broadcast %101 : vector<1x256xf32> to vector<16x256xf32>
    %103 = arith.mulf %87, %102 : vector<16x256xf32>
    %104 = vector.broadcast %88 : vector<16x1xf32> to vector<16x256xf32>
    %105 = arith.mulf %103, %104 : vector<16x256xf32>
    %106 = arith.addf %84, %105 : vector<16x256xf32>
    %107 = vector.extract_strided_slice %19 {offsets = [0, 4], sizes = [16, 1], strides = [1, 1]} : vector<16x9xf32> to vector<16x1xf32>
    %108 = vector.broadcast %107 : vector<16x1xf32> to vector<16x256xf32>
    %109 = arith.mulf %15, %108 : vector<16x256xf32>
    %110 = arith.addf %106, %109 : vector<16x256xf32>
    %111 = vector.extract_strided_slice %15 {offsets = [0, 1], sizes = [16, 255], strides = [1, 1]} : vector<16x256xf32> to vector<16x255xf32>
    %112 = vector.extract_strided_slice %15 {offsets = [0, 0], sizes = [16, 1], strides = [1, 1]} : vector<16x256xf32> to vector<16x1xf32>
    %113 = tpu.concatenate %111, %112 in 1 : vector<16x255xf32>, vector<16x1xf32> -> vector<16x256xf32>
    %114 = vector.extract_strided_slice %19 {offsets = [0, 5], sizes = [16, 1], strides = [1, 1]} : vector<16x9xf32> to vector<16x1xf32>
    %cst_30 = arith.constant 0.000000e+00 : f32
    %115 = vector.broadcast %cst_30 : f32 to vector<1x256xf32>
    %116 = arith.cmpf oge, %17, %115 : vector<1x256xf32>
    %cst_31 = arith.constant 1.500000e+01 : f32
    %117 = vector.broadcast %cst_31 : f32 to vector<1x256xf32>
    %118 = arith.cmpf ole, %17, %117 : vector<1x256xf32>
    %119 = arith.andi %116, %118 : vector<1x256xi1>
    %cst_32 = arith.constant -1.000000e+00 : f32
    %120 = vector.broadcast %cst_32 : f32 to vector<1x256xf32>
    %121 = arith.cmpf oge, %18, %120 : vector<1x256xf32>
    %122 = arith.andi %119, %121 : vector<1x256xi1>
    %cst_33 = arith.constant 1.400000e+01 : f32
    %123 = vector.broadcast %cst_33 : f32 to vector<1x256xf32>
    %124 = arith.cmpf ole, %18, %123 : vector<1x256xf32>
    %125 = arith.andi %122, %124 : vector<1x256xi1>
    %126 = arith.extui %125 : vector<1x256xi1> to vector<1x256xi32>
    %127 = arith.sitofp %126 : vector<1x256xi32> to vector<1x256xf32>
    %128 = vector.broadcast %127 : vector<1x256xf32> to vector<16x256xf32>
    %129 = arith.mulf %113, %128 : vector<16x256xf32>
    %130 = vector.broadcast %114 : vector<16x1xf32> to vector<16x256xf32>
    %131 = arith.mulf %129, %130 : vector<16x256xf32>
    %132 = arith.addf %110, %131 : vector<16x256xf32>
    %133 = vector.extract_strided_slice %15 {offsets = [0, 15], sizes = [16, 241], strides = [1, 1]} : vector<16x256xf32> to vector<16x241xf32>
    %134 = vector.extract_strided_slice %15 {offsets = [0, 0], sizes = [16, 15], strides = [1, 1]} : vector<16x256xf32> to vector<16x15xf32>
    %135 = tpu.concatenate %133, %134 in 1 : vector<16x241xf32>, vector<16x15xf32> -> vector<16x256xf32>
    %136 = vector.extract_strided_slice %19 {offsets = [0, 6], sizes = [16, 1], strides = [1, 1]} : vector<16x9xf32> to vector<16x1xf32>
    %cst_34 = arith.constant -1.000000e+00 : f32
    %137 = vector.broadcast %cst_34 : f32 to vector<1x256xf32>
    %138 = arith.cmpf oge, %17, %137 : vector<1x256xf32>
    %cst_35 = arith.constant 1.400000e+01 : f32
    %139 = vector.broadcast %cst_35 : f32 to vector<1x256xf32>
    %140 = arith.cmpf ole, %17, %139 : vector<1x256xf32>
    %141 = arith.andi %138, %140 : vector<1x256xi1>
    %cst_36 = arith.constant 1.000000e+00 : f32
    %142 = vector.broadcast %cst_36 : f32 to vector<1x256xf32>
    %143 = arith.cmpf oge, %18, %142 : vector<1x256xf32>
    %144 = arith.andi %141, %143 : vector<1x256xi1>
    %cst_37 = arith.constant 1.600000e+01 : f32
    %145 = vector.broadcast %cst_37 : f32 to vector<1x256xf32>
    %146 = arith.cmpf ole, %18, %145 : vector<1x256xf32>
    %147 = arith.andi %144, %146 : vector<1x256xi1>
    %148 = arith.extui %147 : vector<1x256xi1> to vector<1x256xi32>
    %149 = arith.sitofp %148 : vector<1x256xi32> to vector<1x256xf32>
    %150 = vector.broadcast %149 : vector<1x256xf32> to vector<16x256xf32>
    %151 = arith.mulf %135, %150 : vector<16x256xf32>
    %152 = vector.broadcast %136 : vector<16x1xf32> to vector<16x256xf32>
    %153 = arith.mulf %151, %152 : vector<16x256xf32>
    %154 = arith.addf %132, %153 : vector<16x256xf32>
    %155 = vector.extract_strided_slice %15 {offsets = [0, 16], sizes = [16, 240], strides = [1, 1]} : vector<16x256xf32> to vector<16x240xf32>
    %156 = vector.extract_strided_slice %15 {offsets = [0, 0], sizes = [16, 16], strides = [1, 1]} : vector<16x256xf32> to vector<16x16xf32>
    %157 = tpu.concatenate %155, %156 in 1 : vector<16x240xf32>, vector<16x16xf32> -> vector<16x256xf32>
    %158 = vector.extract_strided_slice %19 {offsets = [0, 7], sizes = [16, 1], strides = [1, 1]} : vector<16x9xf32> to vector<16x1xf32>
    %cst_38 = arith.constant -1.000000e+00 : f32
    %159 = vector.broadcast %cst_38 : f32 to vector<1x256xf32>
    %160 = arith.cmpf oge, %17, %159 : vector<1x256xf32>
    %cst_39 = arith.constant 1.400000e+01 : f32
    %161 = vector.broadcast %cst_39 : f32 to vector<1x256xf32>
    %162 = arith.cmpf ole, %17, %161 : vector<1x256xf32>
    %163 = arith.andi %160, %162 : vector<1x256xi1>
    %cst_40 = arith.constant 0.000000e+00 : f32
    %164 = vector.broadcast %cst_40 : f32 to vector<1x256xf32>
    %165 = arith.cmpf oge, %18, %164 : vector<1x256xf32>
    %166 = arith.andi %163, %165 : vector<1x256xi1>
    %cst_41 = arith.constant 1.500000e+01 : f32
    %167 = vector.broadcast %cst_41 : f32 to vector<1x256xf32>
    %168 = arith.cmpf ole, %18, %167 : vector<1x256xf32>
    %169 = arith.andi %166, %168 : vector<1x256xi1>
    %170 = arith.extui %169 : vector<1x256xi1> to vector<1x256xi32>
    %171 = arith.sitofp %170 : vector<1x256xi32> to vector<1x256xf32>
    %172 = vector.broadcast %171 : vector<1x256xf32> to vector<16x256xf32>
    %173 = arith.mulf %157, %172 : vector<16x256xf32>
    %174 = vector.broadcast %158 : vector<16x1xf32> to vector<16x256xf32>
    %175 = arith.mulf %173, %174 : vector<16x256xf32>
    %176 = arith.addf %154, %175 : vector<16x256xf32>
    %177 = vector.extract_strided_slice %15 {offsets = [0, 17], sizes = [16, 239], strides = [1, 1]} : vector<16x256xf32> to vector<16x239xf32>
    %178 = vector.extract_strided_slice %15 {offsets = [0, 0], sizes = [16, 17], strides = [1, 1]} : vector<16x256xf32> to vector<16x17xf32>
    %179 = tpu.concatenate %177, %178 in 1 : vector<16x239xf32>, vector<16x17xf32> -> vector<16x256xf32>
    %180 = vector.extract_strided_slice %19 {offsets = [0, 8], sizes = [16, 1], strides = [1, 1]} : vector<16x9xf32> to vector<16x1xf32>
    %cst_42 = arith.constant -1.000000e+00 : f32
    %181 = vector.broadcast %cst_42 : f32 to vector<1x256xf32>
    %182 = arith.cmpf oge, %17, %181 : vector<1x256xf32>
    %cst_43 = arith.constant 1.400000e+01 : f32
    %183 = vector.broadcast %cst_43 : f32 to vector<1x256xf32>
    %184 = arith.cmpf ole, %17, %183 : vector<1x256xf32>
    %185 = arith.andi %182, %184 : vector<1x256xi1>
    %cst_44 = arith.constant -1.000000e+00 : f32
    %186 = vector.broadcast %cst_44 : f32 to vector<1x256xf32>
    %187 = arith.cmpf oge, %18, %186 : vector<1x256xf32>
    %188 = arith.andi %185, %187 : vector<1x256xi1>
    %cst_45 = arith.constant 1.400000e+01 : f32
    %189 = vector.broadcast %cst_45 : f32 to vector<1x256xf32>
    %190 = arith.cmpf ole, %18, %189 : vector<1x256xf32>
    %191 = arith.andi %188, %190 : vector<1x256xi1>
    %192 = arith.extui %191 : vector<1x256xi1> to vector<1x256xi32>
    %193 = arith.sitofp %192 : vector<1x256xi32> to vector<1x256xf32>
    %194 = vector.broadcast %193 : vector<1x256xf32> to vector<16x256xf32>
    %195 = arith.mulf %179, %194 : vector<16x256xf32>
    %196 = vector.broadcast %180 : vector<16x1xf32> to vector<16x256xf32>
    %197 = arith.mulf %195, %196 : vector<16x256xf32>
    %198 = arith.addf %176, %197 : vector<16x256xf32>
    %c0_46 = arith.constant 0 : index
    %c0_47 = arith.constant 0 : index
    %199 = vector.load %arg6[%c0_46, %c0_47] : memref<16x1xf32, #tpu.memory_space<vmem>>, vector<16x1xf32>
    %200 = vector.broadcast %199 : vector<16x1xf32> to vector<16x256xf32>
    %201 = arith.addf %198, %200 : vector<16x256xf32>
    %cst_48 = arith.constant dense<0.000000e+00> : vector<16xf32>
    %202 = vector.multi_reduction <add>, %198, %cst_48 [1] : vector<16x256xf32> to vector<16xf32>
    %203 = vector.shape_cast %202 : vector<16xf32> to vector<16x1xf32>
    %cst_49 = arith.constant 3.906250e-03 : f32
    %204 = vector.broadcast %cst_49 : f32 to vector<16x1xf32>
    %205 = arith.mulf %203, %204 : vector<16x1xf32>
    %c0_50 = arith.constant 0 : index
    %c0_51 = arith.constant 0 : index
    %206 = vector.load %arg6[%c0_50, %c0_51] : memref<16x1xf32, #tpu.memory_space<vmem>>, vector<16x1xf32>
    %207 = arith.addf %205, %206 : vector<16x1xf32>
    %c0_52 = arith.constant 0 : index
    %c0_53 = arith.constant 0 : index
    %208 = vector.load %arg7[%c0_52, %c0_53] : memref<8x16xf32, #tpu.memory_space<vmem>>, vector<8x16xf32>
    %cst_54 = arith.constant dense<0.000000e+00> : vector<8x1xf32>
    %209 = tpu.matmul %208, %207, %cst_54 {dimension_numbers = #tpu.dot_dimension_numbers<[1], [0], [0], [1], [0, 0, 1, 1], [], []>} : vector<8x16xf32>, vector<16x1xf32>, vector<8x1xf32> -> vector<8x1xf32>
    %c0_55 = arith.constant 0 : index
    %c0_56 = arith.constant 0 : index
    %210 = vector.load %arg8[%c0_55, %c0_56] : memref<8x1xf32, #tpu.memory_space<vmem>>, vector<8x1xf32>
    %211 = arith.addf %209, %210 : vector<8x1xf32>
    %cst_57 = arith.constant 0.000000e+00 : f32
    %212 = vector.broadcast %cst_57 : f32 to vector<8x1xf32>
    %213 = arith.maximumf %211, %212 : vector<8x1xf32>
    %c0_58 = arith.constant 0 : index
    %c0_59 = arith.constant 0 : index
    %214 = vector.load %arg9[%c0_58, %c0_59] : memref<16x8xf32, #tpu.memory_space<vmem>>, vector<16x8xf32>
    %cst_60 = arith.constant dense<0.000000e+00> : vector<16x1xf32>
    %215 = tpu.matmul %214, %213, %cst_60 {dimension_numbers = #tpu.dot_dimension_numbers<[1], [0], [0], [1], [0, 0, 1, 1], [], []>} : vector<16x8xf32>, vector<8x1xf32>, vector<16x1xf32> -> vector<16x1xf32>
    %c0_61 = arith.constant 0 : index
    %c0_62 = arith.constant 0 : index
    %216 = vector.load %arg10[%c0_61, %c0_62] : memref<16x1xf32, #tpu.memory_space<vmem>>, vector<16x1xf32>
    %217 = arith.addf %215, %216 : vector<16x1xf32>
    %cst_63 = arith.constant 3.000000e+00 : f32
    %218 = vector.broadcast %cst_63 : f32 to vector<16x1xf32>
    %219 = arith.addf %217, %218 : vector<16x1xf32>
    %cst_64 = arith.constant 0.000000e+00 : f32
    %cst_65 = arith.constant 6.000000e+00 : f32
    %220 = vector.broadcast %cst_64 : f32 to vector<16x1xf32>
    %221 = arith.maximumf %220, %219 : vector<16x1xf32>
    %222 = vector.broadcast %cst_65 : f32 to vector<16x1xf32>
    %223 = arith.minimumf %222, %221 : vector<16x1xf32>
    %cst_66 = arith.constant 0.166666672 : f32
    %224 = vector.broadcast %cst_66 : f32 to vector<16x1xf32>
    %225 = arith.mulf %223, %224 : vector<16x1xf32>
    %226 = vector.broadcast %225 : vector<16x1xf32> to vector<16x256xf32>
    %227 = arith.mulf %201, %226 : vector<16x256xf32>
    %cst_67 = arith.constant 3.000000e+00 : f32
    %228 = vector.broadcast %cst_67 : f32 to vector<16x256xf32>
    %229 = arith.addf %227, %228 : vector<16x256xf32>
    %cst_68 = arith.constant 0.000000e+00 : f32
    %cst_69 = arith.constant 6.000000e+00 : f32
    %230 = vector.broadcast %cst_68 : f32 to vector<16x256xf32>
    %231 = arith.maximumf %230, %229 : vector<16x256xf32>
    %232 = vector.broadcast %cst_69 : f32 to vector<16x256xf32>
    %233 = arith.minimumf %232, %231 : vector<16x256xf32>
    %cst_70 = arith.constant 0.166666672 : f32
    %234 = vector.broadcast %cst_70 : f32 to vector<16x256xf32>
    %235 = arith.mulf %233, %234 : vector<16x256xf32>
    %236 = arith.mulf %227, %235 : vector<16x256xf32>
    %c0_71 = arith.constant 0 : index
    %c0_72 = arith.constant 0 : index
    %237 = vector.load %arg11[%c0_71, %c0_72] : memref<4x16xf32, #tpu.memory_space<vmem>>, vector<4x16xf32>
    %cst_73 = arith.constant dense<0.000000e+00> : vector<4x256xf32>
    %238 = tpu.matmul %237, %236, %cst_73 {dimension_numbers = #tpu.dot_dimension_numbers<[1], [0], [0], [1], [0, 0, 1, 1], [], []>} : vector<4x16xf32>, vector<16x256xf32>, vector<4x256xf32> -> vector<4x256xf32>
    %c0_74 = arith.constant 0 : index
    %c0_75 = arith.constant 0 : index
    %239 = vector.load %arg12[%c0_74, %c0_75] : memref<4x1xf32, #tpu.memory_space<vmem>>, vector<4x1xf32>
    %240 = vector.broadcast %239 : vector<4x1xf32> to vector<4x256xf32>
    %241 = arith.addf %238, %240 : vector<4x256xf32>
    %242 = arith.addf %241, %1 : vector<4x256xf32>
    %c0_76 = arith.constant 0 : index
    %c0_77 = arith.constant 0 : index
    %c0_78 = arith.constant 0 : index
    %243 = vector.load %arg13[%c0_76, %c0_77, %c0_78] : memref<1x4x256xf32, #tpu.memory_space<vmem>>, vector<1x4x256xf32>
    %244 = vector.shape_cast %243 : vector<1x4x256xf32> to vector<4x256xf32>
    %245 = vector.shape_cast %242 : vector<4x256xf32> to vector<1x4x256xf32>
    tpu.vector_store %arg13[%c0_76, %c0_77, %c0_78], %245 {strides = array<i32>} : memref<1x4x256xf32, #tpu.memory_space<vmem>>, vector<1x4x256xf32>,
    return
  }
  func.func @transform_0(%arg0: i32) -> (i32, i32, i32) {
    %c0_i32 = arith.constant 0 : i32
    %c0_i32_0 = arith.constant 0 : i32
    %c0_i32_1 = arith.constant 0 : i32
    return %arg0, %c0_i32, %c0_i32_0 : i32, i32, i32
  }
  func.func @transform_1(%arg0: i32) -> (i32, i32) {
    %c0_i32 = arith.constant 0 : i32
    %c0_i32_0 = arith.constant 0 : i32
    %c0_i32_1 = arith.constant 0 : i32
    return %c0_i32, %c0_i32_0 : i32, i32
  }
  func.func @transform_2(%arg0: i32) -> (i32, i32) {
    %c0_i32 = arith.constant 0 : i32
    %c0_i32_0 = arith.constant 0 : i32
    %c0_i32_1 = arith.constant 0 : i32
    return %c0_i32, %c0_i32_0 : i32, i32
  }
  func.func @transform_3(%arg0: i32) -> (i32, i32) {
    %c0_i32 = arith.constant 0 : i32
    %c0_i32_0 = arith.constant 0 : i32
    %c0_i32_1 = arith.constant 0 : i32
    return %c0_i32, %c0_i32_0 : i32, i32
  }
  func.func @transform_4(%arg0: i32) -> (i32, i32) {
    %c0_i32 = arith.constant 0 : i32
    %c0_i32_0 = arith.constant 0 : i32
    %c0_i32_1 = arith.constant 0 : i32
    return %c0_i32, %c0_i32_0 : i32, i32
  }
  func.func @transform_5(%arg0: i32) -> (i32, i32) {
    %c0_i32 = arith.constant 0 : i32
    %c0_i32_0 = arith.constant 0 : i32
    %c0_i32_1 = arith.constant 0 : i32
    return %c0_i32, %c0_i32_0 : i32, i32
  }
  func.func @transform_6(%arg0: i32) -> (i32, i32) {
    %c0_i32 = arith.constant 0 : i32
    %c0_i32_0 = arith.constant 0 : i32
    %c0_i32_1 = arith.constant 0 : i32
    return %c0_i32, %c0_i32_0 : i32, i32
  }
  func.func @transform_7(%arg0: i32) -> (i32, i32) {
    %c0_i32 = arith.constant 0 : i32
    %c0_i32_0 = arith.constant 0 : i32
    %c0_i32_1 = arith.constant 0 : i32
    return %c0_i32, %c0_i32_0 : i32, i32
  }
  func.func @transform_8(%arg0: i32) -> (i32, i32) {
    %c0_i32 = arith.constant 0 : i32
    %c0_i32_0 = arith.constant 0 : i32
    %c0_i32_1 = arith.constant 0 : i32
    return %c0_i32, %c0_i32_0 : i32, i32
  }
  func.func @transform_9(%arg0: i32) -> (i32, i32) {
    %c0_i32 = arith.constant 0 : i32
    %c0_i32_0 = arith.constant 0 : i32
    %c0_i32_1 = arith.constant 0 : i32
    return %c0_i32, %c0_i32_0 : i32, i32
  }
  func.func @transform_10(%arg0: i32) -> (i32, i32) {
    %c0_i32 = arith.constant 0 : i32
    %c0_i32_0 = arith.constant 0 : i32
    %c0_i32_1 = arith.constant 0 : i32
    return %c0_i32, %c0_i32_0 : i32, i32
  }
  func.func @transform_11(%arg0: i32) -> (i32, i32) {
    %c0_i32 = arith.constant 0 : i32
    %c0_i32_0 = arith.constant 0 : i32
    %c0_i32_1 = arith.constant 0 : i32
    return %c0_i32, %c0_i32_0 : i32, i32
  }
  func.func @transform_12(%arg0: i32) -> (i32, i32, i32) {
    %c0_i32 = arith.constant 0 : i32
    %c0_i32_0 = arith.constant 0 : i32
    %c0_i32_1 = arith.constant 0 : i32
    return %arg0, %c0_i32, %c0_i32_0 : i32, i32, i32
  }
}

</mosaic_0001>

<bundles_post_ra>
// kernel: tpu_custom_call.1
= control target key start
LH: loop header
LB: loop body
LE: loop exit
PB: predicated region body
PF: predicated region fallthrough
CT: control target
= control target key end

     0   :  { %6 = vsyncpa [#allocation3], 0  ;;  %s128_s0 = inlined_call_operand.hbm [shape: f32[8,128], index: 0, kind: input, shape index: {}]   ;;  %s129_s1 = inlined_call_operand.hbm [shape: f32[8,128], index: 1, kind: output, shape index: {}]  }
   0x1   :  { %7 = vsyncpa [#allocation4], 0  ;;  %s91_s6 = smov [#allocation2]   ;;  %s43_s10 = scalar_lea.hbm %s128_s0, 128 }
   0x2   :  { %s14_s7 = sshll.u32 %s91_s6, 4  ;;  %p44_p0 = scmp.ne.s32.totalorder %s128_s0, %s43_s10  ;;  %s15_s7 = int_to_ptr.vmem [resolvable:$true] %s14_s7 }
   0x3   :  { %p47_p1 = scmp.lt.u32.totalorder %s43_s10, %s128_s0 }
   0x5   :  { %p49_p2 = pnand %p47_p1, %p44_p0 }
   0x7   :  { %52 = shalt.err (!%p49_p2)
}
   0x8   :  { %s53_s15 = scalar_lea.vmem %s15_s7, 128  ;;  %p58_p4 = scmp.lt.s32.totalorder %s15_s7, %s15_s7 }
   0x9   :  { %p54_p3 = scmp.ne.s32.totalorder %s15_s7, %s53_s15  ;;  %p59_p5 = scmp.lt.s32.totalorder %s53_s15, %s53_s15 }
   0xb   :  { %p60_p6 = por %p59_p5, %p58_p4 }
   0xd   :  { %p61_p7 = pnand %p60_p6, %p54_p3 }
   0xf   :  { %64 = shalt.err (!%p61_p7)
}
  0x10   :  { %17 = dma.hbm_to_vmem [thread:$0]  %s128_s0, 128, %s15_s7, [#allocation3]  }
  0x11   :  { %87 = dma.done.wait [#allocation3], 128  }
  0x12   :  { %88 = vsyncadd [#allocation3], 4294967168  ;;  %v21_v0 = vld [vmem:[#allocation2] sm:$0xff]  ;;  %s92_s18 = smov 3   ;;  %s93_s19 = smov [#allocation5]  }
  0x13   :  { %22 = vrot.lane.b32.xlu0 %v21_v0, %s92_s18  ;;  %s31_s20 = sshll.u32 %s93_s19, 4  ;;  %s32_s20 = int_to_ptr.vmem [resolvable:$true] %s31_s20 }
  0x14   :  { %s65_s21 = scalar_lea.vmem %s32_s20, 128  ;;  %p70_p9 = scmp.lt.s32.totalorder %s32_s20, %s32_s20 }
  0x15   :  { %p66_p8 = scmp.ne.s32.totalorder %s32_s20, %s65_s21  ;;  %p71_p10 = scmp.lt.s32.totalorder %s65_s21, %s65_s21 }
  0x17   :  { %p72_p11 = por %p71_p10, %p70_p9 }
  0x19   :  { %p73_p12 = pnand %p72_p11, %p66_p8 }
  0x85   :  { %v23_v1 = vpop.permute.xlu0 %22 }
  0x86   :  { %24 = vst [vmem:[#allocation5] sm:$0xff] %v23_v1 }
  0x87   :  { %76 = shalt.err (!%p73_p12)
}
  0x88   :  { %s77_s0 = scalar_lea.hbm %s129_s1, 128 }
  0x89   :  { %p78_p13 = scmp.ne.s32.totalorder %s129_s1, %s77_s0  ;;  %p81_p0 = scmp.lt.u32.totalorder %s77_s0, %s129_s1 }
  0x8b   :  { %p83_p1 = pnand %p81_p0, %p78_p13 }
  0x8d   :  { %86 = shalt.err (!%p83_p1)
}
  0x8e   :  { %34 = dma.vmem_to_hbm [thread:$0]  %s32_s20, 128, %s129_s1, [#allocation4]  }
  0x8f   :  { %89 = dma.done.wait [#allocation4], 128  }
  0x90   :  { %90 = vsyncadd [#allocation4], 4294967168 }
  0x91   :  { %38 = vsyncpa [#allocation3], 1 }
  0x92   :  { %39 = vsyncpa [#allocation4], 1 }

// kernel: tpu_custom_call.1
= control target key start
LH: loop header
LB: loop body
LE: loop exit
PB: predicated region body
PF: predicated region fallthrough
CT: control target
= control target key end

     0   :  { %s2395_s0 = inlined_call_operand.vmem [shape: f32[2,4,256], index: 0, kind: input, shape index: {}]   ;;  %s2396_s1 = inlined_call_operand.vmem [shape: f32[2,256], index: 1, kind: input, shape index: {}]   ;;  %s2397_s2 = inlined_call_operand.vmem [shape: f32[16,4], index: 2, kind: input, shape index: {}]   ;;  %s2398_s3 = inlined_call_operand.vmem [shape: f32[16,1], index: 3, kind: input, shape index: {}]   ;;  %s2399_s4 = inlined_call_operand.vmem [shape: f32[16,9], index: 4, kind: input, shape index: {}]   ;;  %s2400_s5 = inlined_call_operand.vmem [shape: f32[16,1], index: 5, kind: input, shape index: {}]   ;;  %s2401_s6 = inlined_call_operand.vmem [shape: f32[8,16], index: 6, kind: input, shape index: {}]   ;;  %s2402_s7 = inlined_call_operand.vmem [shape: f32[8,1], index: 7, kind: input, shape index: {}]   ;;  %s2403_s8 = inlined_call_operand.vmem [shape: f32[16,8], index: 8, kind: input, shape index: {}]   ;;  %s2404_s9 = inlined_call_operand.vmem [shape: f32[16,1], index: 9, kind: input, shape index: {}]   ;;  %s2405_s10 = inlined_call_operand.vmem [shape: f32[4,16], index: 10, kind: input, shape index: {}]   ;;  %s2406_s11 = inlined_call_operand.vmem [shape: f32[4,1], index: 11, kind: input, shape index: {}]   ;;  %s2407_s12 = inlined_call_operand.hbm [shape: f32[2,4,256], index: 12, kind: output, shape index: {}]  }
   0x1   :  { %2410 = sst [smem:[#allocation5_spill]] %s2395_s0 }
   0x2   :  { %2411 = sst [smem:[#allocation6_spill]] %s2396_s1 }
   0x3   :  { %17 = vsyncpa [#allocation3], 0 }
   0x4   :  { %19 = vsyncpa [#allocation3 + $0x1], 0  ;;  %s1772_s21 = smov 0   ;;  %s1774_s22 = smov 0  }
   0x5   :  { %s1776_s23 = smov 0   ;;  %s1778_s24 = smov 0  }
   0x6 LB: > { %s1793_s25 = sadd.s32 4294967295, %s1684_s24   ;;  %s1481_s26 = sadd.s32 4294967294, %s1684_s24   ;;  %s1684_s24 = sphi %s1778_s24, %s2440_s24   ;;  %s1680_s23 = sphi %s1776_s23, %s2439_s23   ;;  %s1676_s22 = sphi %s1774_s22, %s2438_s22   ;;  %s1672_s21 = sphi %s1772_s21, %s2437_s21  }
   0x7   : > { %s1797_s27 = sadd.s32 1, %s1684_s24   ;;  %s289_s28 = sadd.s32 1, %s1680_s23 }
   0x8   : > { %s286_s29 = ssub.s32 %s1684_s24, %s1797_s27  ;;  %p299_p0 = scmp.ne.s32.totalorder %s1680_s23, %s1676_s22 }
   0x9   : > { %p287_p1 = scmp.eq.s32.totalorder %s286_s29, 0  ;;  %p300_p2 = scmp.eq.s32.totalorder %s1793_s25, 1 }
   0xa   : > { %p305_p3 = scmp.ne.s32.totalorder %s1676_s22, %s1672_s21  ;;  %p306_p4 = scmp.eq.s32.totalorder %s1481_s26, 1 }
   0xb   : > { %s1808_s30 = scalar_select %p287_p1, %s1680_s23, %s289_s28  }
   0xc   : > { %p1810_p5 = por %p300_p2, %p299_p0  ;;  %p1814_p6 = por %p306_p4, %p305_p3 }
   0xd   : > { %p1484_p7 = scmp.ge.s32.totalorder %s1684_s24, 1  ;;  %p365_p8 = scmp.lt.s32.totalorder %s1684_s24, 3 }
   0xf   : > { %p366_p9 = pnand %p1484_p7, %p365_p8 }
  0x10   : > { %p407_p10 = scmp.lt.s32.totalorder (!%p366_p9), %s1793_s25, 1  ;;  %v2408_v0 = vmov (!%p366_p9), 0.0   ;;  %v539_v1 = vld [vmem:[%s2399_s4] sm:$0xff] (!%p366_p9)  ;;  %v1687_v3 = vmov (!%p366_p9), 0   ;;  %v540_v4 = vld [vmem:[%s2399_s4 + $0x8] sm:$0xff] (!%p366_p9)  ;;  %s2414_s0 = sld [smem:[#allocation5_spill]] (!%p366_p9) }
  0x11   : > { %369 = sbr.rel (%p366_p9) target bundleno = 1432 (0x598), region = 68  ;;  %505 = vmatprep.mubr.f32.mxu0 (!%p366_p9), %v2408_v0  ;;  %v415_v2 = vld [vmem:[%s2398_s3] sm:$0xff] (!%p366_p9)  ;;  %1602 = vset.pattern.permute.xlu1 (!%p366_p9), %v1687_v3  ;;  %v416_v5 = vld [vmem:[%s2398_s3 + $0x8] sm:$0xff] (!%p366_p9)  ;;  %vm436_vm0 = vcmask (!%p366_p9), 1043456   ;;  %vm429_vm1 = vcmask (!%p366_p9), 31744   ;;  %v1688_v9 = vmov (!%p366_p9), 1  }
  0x12   : > { %1601 = vset.pattern.permute.xlu0 (!%p366_p9), %v1687_v3  ;;  %604 = vperm.xlu1 (!%p366_p9), %1602, %v539_v1   ;;  %v413_v8 = vld [vmem:[%s2397_s2] sm:$0xff] (!%p366_p9)  ;;  %v414_v10 = vld [vmem:[%s2397_s2 + $0x8] sm:$0xff] (!%p366_p9)  ;;  %v1689_v11 = vmov (!%p366_p9), 2   ;;  %v1690_v12 = vmov (!%p366_p9), 3   ;;  %v1691_v13 = vmov (!%p366_p9), 4   ;;  %v1692_v14 = vmov (!%p366_p9), 5  }
  0x13   : > { %419 = vperm.xlu0 (!%p366_p9), %1601, %v415_v2   ;;  %v1693_v15 = vmov (!%p366_p9), 6   ;;  %v1694_v16 = vmov (!%p366_p9), 7   ;;  %v1695_v17 = vmov (!%p366_p9), 8   ;;  %s1696_s29 = smov (!%p366_p9), 15   ;;  %s1697_s15 = smov (!%p366_p9), 17  }
  0x14   : > { %s1698_s16 = smov (!%p366_p9), 127   ;;  %s1699_s17 = smov (!%p366_p9), 16  }
  0x15   : > { %s1702_s26 = smov (!%p366_p9), 112   ;;  %s2415_s1 = sld [smem:[#allocation6_spill]] (!%p366_p9) }
  0x16   : > { %609 = vperm.xlu1 (!%p366_p9), %1602, %v540_v4  }
  0x17   : > { %424 = vperm.xlu0 (!%p366_p9), %1601, %v416_v5  }
  0x18   : > { %s408_s19 = scalar_select %p407_p10, %s1793_s25, 1 }
  0x1a   : > { %s1515_s20 = sshll.u32 %s408_s19, 3  ;;  %1604 = vset.pattern.permute.xlu1 %v1688_v9  ;;  %s1701_s19 = smov 1  }
  0x1b   : > { %s411_s18 = scalar_lea.vmem %s2414_s0, %s1515_s20  ;;  %677 = vperm.xlu1 %1604, %v540_v4   ;;  %1603 = vset.pattern.permute.xlu0 %v1688_v9  ;;  %s1703_s20 = smov 111   ;;  %v1940_v9 = vld [vmem:[%s2415_s1] sm:$0xf] }
  0x1c   : > { %v1840_v6 = vld [vmem:[%s411_s18] sm:$0xff]  ;;  %673 = vperm.xlu0 %1603, %v539_v1   ;;  %s1700_s18 = smov 113   ;;  %vm635_vm2 = vcmp.ge.f32.partialorder %v1940_v9, 0.0  ;;  %vm641_vm3 = vcmp.le.f32.partialorder %v1940_v9, 15.0  ;;  %vm564_vm4 = vcmp.ge.f32.partialorder %v1940_v9, 1.0  ;;  %vm707_vm5 = vcmp.ge.f32.partialorder %v1940_v9, -1.0 }
  0x1d   : > { %v1844_v7 = vcombine.high %v1840_v6, %v1840_v6  ;;  %vm565_vm6 = vcmp.le.f32.partialorder %v1940_v9, 16.0  ;;  %vm713_vm9 = vcmp.le.f32.partialorder %v1940_v9, 14.0 }
  0x1e   : > { %vm1967_vm7 = vmand %vm564_vm4, %vm565_vm6 }
  0x1f   : > { %1488 = vmatprep.subr.msk.mxu0 %vm436_vm0, %v1844_v7  ;;  %1605 = vset.pattern.permute.xlu1 %v1689_v11 }
  0x20   : > { %1489 = vmatpush1.msk.msra.mxu0 %vm436_vm0, %v1840_v6  ;;  %745 = vperm.xlu1 %1605, %v539_v1  }
  0x21   : > { %1490 = vmatmul.mubr.msk.f32.vlgmr.msra.gmra.mrb[0].mxu0 %vm429_vm1, %v413_v8  ;;  %1606 = vset.pattern.permute.xlu0 %v1689_v11 }
  0x22   : > { %511 = vmatprep.mubr.f32.mxu0 %v2408_v0  ;;  %749 = vperm.xlu0 %1606, %v540_v4  }
  0x24   : > { %1608 = vset.pattern.permute.xlu1 %v1690_v12 }
  0x25   : > { %1491 = vmatmul.mubr.msk.f32.gmra.mrb[2].mxu0 %vm429_vm1, %v414_v10  ;;  %812 = vperm.xlu1 %1608, %v540_v4   ;;  %vm2018_vm1 = vmand %vm635_vm2, %vm641_vm3 }
  0x26   : > { %1392 = vmatprep.mubr.f32.mxu0 %v2408_v0  ;;  %1607 = vset.pattern.permute.xlu0 %v1690_v12 }
  0x27   : > { %808 = vperm.xlu0 %1607, %v539_v1  }
  0x29   : > { %1609 = vset.pattern.permute.xlu1 %v1691_v13 }
  0x2a   : > { %824 = vperm.xlu1 %1609, %v539_v1  }
  0x2b   : > { %1610 = vset.pattern.permute.xlu0 %v1691_v13  ;;  %v636_v13 = vsel %vm635_vm2, 1, %v1687_v3 }
  0x2c   : > { %828 = vperm.xlu0 %1610, %v540_v4  }
  0x2e   : > { %1612 = vset.pattern.permute.xlu1 %v1692_v14 }
  0x2f   : > { %890 = vperm.xlu1 %1612, %v540_v4  }
  0x30   : > { %1611 = vset.pattern.permute.xlu0 %v1692_v14  ;;  %v1495_v14 = vrot.slane %v636_v13, 9 }
  0x31   : > { %886 = vperm.xlu0 %1611, %v539_v1  }
  0x32   : > { %vm1971_vm8 = vcmp.ne.s32.totalorder %v1495_v14, 0 }
  0x33   : > { %1613 = vset.pattern.permute.xlu1 %v1693_v15  ;;  %vm640_vm10 = vmand %vm1967_vm7, %vm1971_vm8 }
  0x34   : > { %949 = vperm.xlu1 %1613, %v539_v1  }
  0x35   : > { %1614 = vset.pattern.permute.xlu0 %v1693_v15  ;;  %v642_v15 = vsel %vm641_vm3, 1, %v1687_v3 }
  0x36   : > { %953 = vperm.xlu0 %1614, %v540_v4  }
  0x38   : > { %1616 = vset.pattern.permute.xlu1 %v1694_v16 }
  0x39   : > { %1015 = vperm.xlu1 %1616, %v540_v4  }
  0x3a   : > { %1615 = vset.pattern.permute.xlu0 %v1694_v16 }
  0x3b   : > { %1011 = vperm.xlu0 %1615, %v539_v1  }
  0x3d   : > { %1617 = vset.pattern.permute.xlu1 %v1695_v17 }
  0x3e   : > { %1073 = vperm.xlu1 %1617, %v539_v1  }
  0x3f   : > { %1618 = vset.pattern.permute.xlu0 %v1695_v17  ;;  %v567_v17 = vsel %vm564_vm4, 1, %v1687_v3 }
  0x40   : > { %1077 = vperm.xlu0 %1618, %v540_v4  }
  0x42   : > { %1620 = vset.pattern.permute.xlu1 %v1687_v3 }
  0x44   : > { %1619 = vset.pattern.permute.xlu0 %v1687_v3 }
  0x91   : > { %v1858_v18 = vpop.permute.xlu1 %604 }
  0x92   : > { %v420_v19 = vpop.permute.xlu0 %419 }
  0x95   : > { %v1860_v20 = vpop.permute.xlu1 %609 }
  0x96   : > { %v425_v21 = vpop.permute.xlu0 %424 }
  0x9a   : > { %v1862_v22 = vpop.permute.xlu1 %677 }
  0x9b   : > { %v1864_v23 = vpop.permute.xlu0 %673 }
  0x9f   : > { %v1866_v24 = vpop.permute.xlu1 %745 }
  0xa1   : > { %v1868_v29 = vpop.permute.xlu0 %749 }
  0xa4   : > { %v1870_v33 = vpop.permute.xlu1 %812 }
  0xa6   : > { %v1872_v41 = vpop.permute.xlu0 %808 }
  0xa9   : > { %v825_v45 = vpop.permute.xlu1 %824 }
  0xab   : > { %v1880_v52 = vpop.permute.xlu0 %828 }
  0xae   : > { %v1921_v61 = vpop.permute.xlu1 %890 }
  0xb0   : > { %v1923_v62 = vpop.permute.xlu0 %886 }
  0xb3   : > { %v1925_v63 = vpop.permute.xlu1 %949 }
  0xb5   : > { %v1927_v1 = vpop.permute.xlu0 %953 }
  0xb8   : > { %v1929_v2 = vpop.permute.xlu1 %1015 }
  0xba   : > { %v1931_v4 = vpop.permute.xlu0 %1011 }
  0xbd   : > { %v1933_v5 = vpop.permute.xlu1 %1073 }
  0xbf   : > { %v1935_v8 = vpop.permute.xlu0 %1077 }
  0xf4   : > { %v507_v25 = vpop.f32.mrb[0].mxu0 }
  0xf5   : > { %v508_v26 = vadd.f32 %v507_v25, %v420_v19  ;;  %v509_v27 = vpop.f32.mrb[1].mxu0  ;;  %v708_v25 = vsel %vm707_vm5, 1, %v1687_v3 }
  0xf6   : > { %v510_v28 = vadd.f32 %v509_v27, %v420_v19 }
  0xf7   : > { %v518_v30 = vadd.f32 3.0, %v508_v26 }
  0xf8   : > { %v519_v31 = vadd.f32 3.0, %v510_v28  ;;  %v513_v32 = vpop.f32.mrb[2].mxu0 }
  0xf9   : > { %v522_v34 = vmax.f32 %v518_v30, 0.0  ;;  %v514_v35 = vadd.f32 %v513_v32, %v425_v21  ;;  %v515_v36 = vpop.f32.mrb[3].mxu0  ;;  %v572_v30 = vsel %vm565_vm6, 1, %v1687_v3  ;;  %v1498_v32 = vrot.slane %v708_v25, 9 }
  0xfa   : > { %v523_v37 = vmax.f32 %v519_v31, 0.0  ;;  %v516_v55 = vadd.f32 %v515_v36, %v425_v21  ;;  %v1496_v21 = vrot.slane %v642_v15, 9  ;;  %v1493_v36 = vrot.slane %v572_v30, 9 }
  0xfb   : > { %v526_v38 = vmin.f32 %v522_v34, 6.0  ;;  %v520_v39 = vadd.f32 3.0, %v514_v35  ;;  %v714_v34 = vsel %vm713_vm9, 1, %v1687_v3  ;;  %vm2002_vm14 = vcmp.ne.s32.totalorder %v1498_v32, 0 }
  0xfc   : > { %v527_v40 = vmin.f32 %v523_v37, 6.0  ;;  %v521_v56 = vadd.f32 3.0, %v516_v55  ;;  %vm1986_vm11 = vcmp.ne.s32.totalorder %v1496_v21, 0  ;;  %vm2010_vm0 = vcmp.ne.s32.totalorder %v1493_v36, 0  ;;  %vm712_vm4 = vmand %vm1967_vm7, %vm2002_vm14 }
  0xfd   : > { %v530_v42 = vmul.f32 0.16666667, %v526_v38  ;;  %v524_v43 = vmax.f32 %v520_v39, 0.0  ;;  %vm1998_vm13 = vmand %vm640_vm10, %vm1986_vm11 }
  0xfe   : > { %v531_v44 = vmul.f32 0.16666667, %v527_v40  ;;  %v525_v57 = vmax.f32 %v521_v56, 0.0  ;;  %v1499_v40 = vrot.slane %v714_v34, 9 }
  0xff   : > { %v534_v46 = vmul.f32 %v530_v42, %v508_v26  ;;  %v528_v47 = vmin.f32 %v524_v43, 6.0  ;;  %v580_v42 = vlaneseq }
 0x100   : > { %v535_v48 = vmul.f32 %v531_v44, %v510_v28  ;;  %v529_v58 = vmin.f32 %v525_v57, 6.0  ;;  %v1492_v28 = vrot.slane %v567_v17, 9  ;;  %vm2026_vm6 = vcmp.ne.s32.totalorder %v1499_v40, 0 }
 0x101   : > { %v532_v49 = vmul.f32 0.16666667, %v528_v47  ;;  %v1874_v50 = vmul.f32 %v825_v45, %v534_v46  ;;  %694 = vrot.lane.b32.xlu1 %v534_v46, %s1696_s29  ;;  %551 = vrot.lane.b32.xlu0 %v534_v46, %s1697_s15  ;;  %vm718_vm3 = vmand %vm712_vm4, %vm2026_vm6  ;;  %vm626_vm4 = vcmask 130048  }
 0x102   : > { %v1878_v51 = vmul.f32 %v825_v45, %v535_v48  ;;  %v533_v59 = vmul.f32 0.16666667, %v529_v58  ;;  %vm1990_vm12 = vcmp.ne.s32.totalorder %v1492_v28, 0  ;;  %v1497_v58 = vsel %vm1998_vm13, 1.0, %v2408_v0  ;;  %vm858_vm13 = vmand %vm2018_vm1, %vm2002_vm14 }
 0x103   : > { %v536_v53 = vmul.f32 %v532_v49, %v514_v35  ;;  %vm571_vm15 = vmand %vm1967_vm7, %vm1990_vm12 }
 0x104   : > { %v1899_v60 = vmul.f32 %v533_v59, %v516_v55  ;;  %vm576_vm10 = vmand %vm571_vm15, %vm2010_vm0  ;;  %v1500_v59 = vsel %vm718_vm3, 1.0, %v2408_v0  ;;  %vm555_vm15 = vcmask 138240  }
 0x105   : > { %v1883_v54 = vmul.f32 %v1880_v52, %v536_v53  ;;  %839 = vrot.lane.b32.xlu1 %v534_v46, %s1698_s16  ;;  %622 = vrot.lane.b32.xlu0 %v534_v46, %s1699_s17  ;;  %vm780_vm2 = vmand %vm2018_vm1, %vm1990_vm12  ;;  %vm770_vm1 = vcmask 7168  }
 0x106   : > { %vm781_vm7 = vmand %vm780_vm2, %vm2010_vm0 }
 0x107   : > { %v1501_v17 = vsel %vm781_vm7, 1.0, %v2408_v0  ;;  %vm2077_vm2 = vmand %vm707_vm5, %vm713_vm9 }
 0x108   : > { %vm859_vm5 = vmand %vm858_vm13, %vm2026_vm6  ;;  %vm1034_vm13 = vcmask 908288  }
 0x109   : > { %901 = vrot.lane.b32.xlu1 %v534_v46, %s1700_s18  ;;  %766 = vrot.lane.b32.xlu0 %v534_v46, %s1701_s19  ;;  %vm921_vm9 = vmand %vm2077_vm2, %vm1990_vm12 }
 0x10a   : > { %vm983_vm12 = vmand %vm2077_vm2, %vm1971_vm8 }
 0x10b   : > { %vm922_vm3 = vmand %vm921_vm9, %vm2010_vm0  ;;  %vm847_vm0 = vcmask 1039360  }
 0x10c   : > { %vm984_vm8 = vmand %vm983_vm12, %vm1986_vm11 }
 0x10d   : > { %964 = vrot.lane.b32.xlu1 %v534_v46, %s1702_s26  ;;  %616 = vrot.lane.b32.xlu0 %v535_v48, %s1699_s17  ;;  %vm1045_vm7 = vmand %vm2077_vm2, %vm2002_vm14  ;;  %vm909_vm14 = vcmask 924672  }
 0x10e   : > { %vm1046_vm11 = vmand %vm1045_vm7, %vm2026_vm6  ;;  %vm972_vm6 = vcmask 916480  }
 0x111   : > { %543 = vrot.lane.b32.xlu1 %v535_v48, %s1697_s15  ;;  %903 = vrot.lane.b32.xlu0 %v535_v48, %s1700_s18 }
 0x115   : > { %688 = vrot.lane.b32.xlu1 %v535_v48, %s1696_s29  ;;  %696 = vrot.lane.b32.xlu0 %v536_v53, %s1696_s29 }
 0x119   : > { %760 = vrot.lane.b32.xlu1 %v535_v48, %s1701_s19  ;;  %843 = vrot.lane.b32.xlu0 %v536_v53, %s1698_s16 }
 0x11d   : > { %841 = vrot.lane.b32.xlu1 %v535_v48, %s1698_s16  ;;  %968 = vrot.lane.b32.xlu0 %v536_v53, %s1702_s26 }
 0x121   : > { %966 = vrot.lane.b32.xlu1 %v535_v48, %s1702_s26  ;;  %690 = vrot.lane.b32.xlu0 %v1899_v60, %s1696_s29 }
 0x125   : > { %553 = vrot.lane.b32.xlu1 %v536_v53, %s1697_s15  ;;  %1026 = vrot.lane.b32.xlu0 %v534_v46, %s1703_s20 }
 0x129   : > { %624 = vrot.lane.b32.xlu1 %v536_v53, %s1699_s17  ;;  %907 = vrot.lane.b32.xlu0 %v1899_v60, %s1700_s18 }
 0x12d   : > { %768 = vrot.lane.b32.xlu1 %v536_v53, %s1701_s19  ;;  %1030 = vrot.lane.b32.xlu0 %v536_v53, %s1703_s20 }
 0x131   : > { %905 = vrot.lane.b32.xlu1 %v536_v53, %s1700_s18  ;;  %v1494_v53 = vsel %vm576_vm10, 1.0, %v2408_v0  ;;  %vm698_vm10 = vcmask 121856  }
 0x135   : > { %545 = vrot.lane.b32.xlu1 %v1899_v60, %s1697_s15 }
 0x139   : > { %618 = vrot.lane.b32.xlu1 %v1899_v60, %s1699_s17  ;;  %s404_s17 = sand.u32 1, %s1676_s22  }
 0x13a   : > { %s1485_s18 = sshll.u32 %s404_s17, 3 }
 0x13d   : > { %1028 = vrot.lane.b32.xlu1 %v535_v48, %s1703_s20  ;;  %v581_v48 = vshrl.u32 %v580_v42, 7 }
 0x13f   : > { %v2039_v56 = vsub.s32 0, %v581_v48  ;;  %v2043_v57 = vsub.s32 2, %v581_v48 }
 0x141   : > { %762 = vrot.lane.b32.xlu1 %v1899_v60, %s1701_s19  ;;  %v583_v13 = vrot.slane %v1494_v53, %v2039_v56  ;;  %v587_v14 = vrot.slane %v1494_v53, %v2043_v57  ;;  %v653_v25 = vrot.slane %v1497_v58, %v2039_v56  ;;  %v725_v26 = vrot.slane %v1500_v59, %v2039_v56  ;;  %s1516_s19 = sshll.u32 %s1793_s25, 7  ;;  %s1706_s25 = smov [#allocation2]  }
 0x142   : > { %v657_v28 = vrot.slane %v1497_v58, %v2043_v57  ;;  %v729_v30 = vrot.slane %v1500_v59, %v2043_v57  ;;  %v788_v34 = vrot.slane %v1501_v17, %v2039_v56  ;;  %v792_v3 = vrot.slane %v1501_v17, %v2043_v57  ;;  %s2353_s15 = scalar_lea.hbm %s2407_s12, %s1516_s19 }
 0x143   : > { %v2065_v32 = vrot.slane %v583_v13, %v2039_v56  ;;  %v2069_v36 = vrot.slane %v587_v14, %v2039_v56  ;;  %v2085_v48 = vrot.slane %v653_v25, %v2039_v56  ;;  %v2090_v58 = vrot.slane %v725_v26, %v2039_v56 }
 0x144   : > { %v2095_v9 = vrot.slane %v657_v28, %v2039_v56  ;;  %v2100_v13 = vrot.slane %v729_v30, %v2039_v56  ;;  %v2112_v26 = vrot.slane %v788_v34, %v2039_v56  ;;  %v2120_v30 = vrot.slane %v792_v3, %v2039_v56 }
 0x145   : > { %845 = vrot.lane.b32.xlu1 %v1899_v60, %s1698_s16  ;;  %s1408_s16 = scalar_lea.sflag [#allocation3], %s404_s17 }
 0x149   : > { %970 = vrot.lane.b32.xlu1 %v1899_v60, %s1702_s26  ;;  %s406_s26 = scalar_lea.vmem [#allocation2], %s1485_s18  ;;  %s1626_s18 = sshll.u32 %s1706_s25, 4  ;;  %s1627_s18 = int_to_ptr.vmem [resolvable:$false] %s1626_s18 }
 0x14a   : > { %s1628_s1 = scalar_lea.vmem %s1627_s18, 256 }
 0x14d   : > { %1032 = vrot.lane.b32.xlu1 %v1899_v60, %s1703_s20  ;;  %s1422_s20 = sshll.u32 %s406_s26, 4  ;;  %s2355_s20 = int_to_ptr.vmem [resolvable:$true] %s1422_s20 }
 0x14e   : > { %s1622_s0 = scalar_lea.vmem %s2355_s20, 128  ;;  %p1629_p0 = scmp.lt.s32.totalorder %s2355_s20, %s1627_s18 }
 0x14f   : > { %p1623_p11 = scmp.ne.s32.totalorder %s2355_s20, %s1622_s0  ;;  %p1630_p1 = scmp.lt.s32.totalorder %s1628_s1, %s1622_s0 }
 0x151   : > { %p1624_p12 = pnand %p1623_p11, %p1810_p5  ;;  %p1631_p2 = por %p1630_p1, %p1629_p0 }
 0x153   : > { %p1625_p13 = pneg %p1624_p12 }
 0x155   : > { %p1632_p3 = pnand %p1631_p2, %p1625_p13 }
 0x173   : > { %v1942_v10 = vpop.permute.xlu1 %694  ;;  %v1945_v11 = vpop.permute.xlu0 %551 }
 0x177   : > { %v1947_v12 = vpop.permute.xlu1 %839  ;;  %v1962_v19 = vpop.permute.xlu0 %622 }
 0x17b   : > { %v1958_v16 = vpop.permute.xlu1 %901  ;;  %v1994_v38 = vpop.permute.xlu0 %766 }
 0x17f   : > { %v1976_v31 = vpop.permute.xlu1 %964  ;;  %v617_v49 = vpop.permute.xlu0 %616 }
 0x180   : > { %v633_v59 = vsel %vm626_vm4, %v617_v49, %v1962_v19 }
 0x183   : > { %v544_v39 = vpop.permute.xlu1 %543  ;;  %v2051_v15 = vpop.permute.xlu0 %903 }
 0x184   : > { %v562_v40 = vsel %vm555_vm15, %v544_v39, %v1945_v11  ;;  %v556_v53 = vsel %vm555_vm15, %v1945_v11, %v544_v39  ;;  %v627_v39 = vsel %vm626_vm4, %v1962_v19, %v617_v49  ;;  %v1502_v49 = vsel %vm859_vm5, 1.0, %v2408_v0 }
 0x185   : > { %v598_v17 = vmul.f32 %v2065_v32, %v562_v40  ;;  %v599_v28 = vmul.f32 %v2069_v36, %v556_v53  ;;  %v669_v34 = vmul.f32 %v2095_v9, %v627_v39  ;;  %v870_v0 = vrot.slane %v1502_v49, %v2043_v57 }
 0x187   : > { %v689_v47 = vpop.permute.xlu1 %688  ;;  %v2104_v11 = vpop.permute.xlu0 %696  ;;  %v612_v53 = vmul.f32 %v1858_v18, %v598_v17  ;;  %v2167_v42 = vrot.slane %v870_v0, %v2039_v56 }
 0x188   : > { %v705_v14 = vsel %vm698_vm10, %v689_v47, %v1942_v10  ;;  %v699_v25 = vsel %vm698_vm10, %v1942_v10, %v689_v47  ;;  %v668_v10 = vmul.f32 %v2085_v48, %v633_v59 }
 0x189   : > { %v740_v47 = vmul.f32 %v2090_v58, %v705_v14  ;;  %v741_v3 = vmul.f32 %v2100_v13, %v699_v25  ;;  %v866_v14 = vrot.slane %v1502_v49, %v2039_v56  ;;  %v2436_v25 = vmov 0.0  }
 0x18a   : > { %v680_v44 = vmul.f32 %v1864_v23, %v668_v10  ;;  %v1504_v10 = vsel %vm984_vm8, 1.0, %v2436_v25  ;;  %v1505_v46 = vsel %vm1046_vm11, 1.0, %v2436_v25 }
 0x18b   : > { %v761_v55 = vpop.permute.xlu1 %760  ;;  %v752_v17 = vmul.f32 %v1866_v24, %v740_v47 }
 0x18c   : > { %v777_v19 = vsel %vm770_vm1, %v761_v55, %v1994_v38  ;;  %v771_v37 = vsel %vm770_vm1, %v1994_v38, %v761_v55  ;;  %v613_v38 = vmul.f32 %v1858_v18, %v599_v28  ;;  %v2144_v55 = vpop.permute.xlu0 %843  ;;  %v681_v18 = vmul.f32 %v1864_v23, %v669_v34 }
 0x18d   : > { %v803_v59 = vmul.f32 %v2112_v26, %v777_v19  ;;  %v804_v27 = vmul.f32 %v2120_v30, %v771_v37  ;;  %v1503_v28 = vsel %vm922_vm3, 1.0, %v2436_v25  ;;  %v753_v19 = vmul.f32 %v1866_v24, %v741_v3 }
 0x18e   : > { %v684_v35 = vadd.f32 %v680_v44, %v612_v53  ;;  %v2162_v37 = vrot.slane %v866_v14, %v2039_v56  ;;  %v685_v47 = vadd.f32 %v681_v18, %v613_v38  ;;  %v929_v24 = vrot.slane %v1503_v28, %v2039_v56 }
 0x18f   : > { %v2054_v21 = vpop.permute.xlu1 %841  ;;  %v815_v49 = vmul.f32 %v1872_v41, %v803_v59  ;;  %v816_v43 = vmul.f32 %v1872_v41, %v804_v27  ;;  %v933_v41 = vrot.slane %v1503_v28, %v2043_v57  ;;  %v991_v14 = vrot.slane %v1504_v10, %v2039_v56 }
 0x190   : > { %v848_v23 = vsel %vm847_vm0, %v1947_v12, %v2054_v21  ;;  %v756_v3 = vadd.f32 %v752_v17, %v684_v35  ;;  %v856_v53 = vsel %vm847_vm0, %v2054_v21, %v1947_v12  ;;  %v757_v0 = vadd.f32 %v753_v19, %v685_v47  ;;  %v2181_v59 = vpop.permute.xlu0 %968 }
 0x191   : > { %v881_v27 = vmul.f32 %v2162_v37, %v848_v23  ;;  %v882_v17 = vmul.f32 %v2167_v42, %v856_v53  ;;  %v995_v18 = vrot.slane %v1504_v10, %v2043_v57  ;;  %v2191_v12 = vrot.slane %v929_v24, %v2039_v56 }
 0x192   : > { %v819_v38 = vadd.f32 %v815_v49, %v756_v3  ;;  %v820_v44 = vadd.f32 %v816_v43, %v757_v0  ;;  %v2194_v21 = vrot.slane %v933_v41, %v2039_v56  ;;  %v910_v28 = vsel %vm909_vm14, %v1958_v16, %v2051_v15 }
 0x193   : > { %v2082_v45 = vpop.permute.xlu1 %966  ;;  %v2200_v19 = vrot.slane %v991_v14, %v2039_v56  ;;  %v1053_v49 = vrot.slane %v1505_v46, %v2039_v56  ;;  %v918_v10 = vsel %vm909_vm14, %v2051_v15, %v1958_v16  ;;  %v893_v43 = vmul.f32 %v1923_v62, %v881_v27 }
 0x194   : > { %v835_v47 = vadd.f32 %v1874_v50, %v819_v38  ;;  %v1057_v23 = vrot.slane %v1505_v46, %v2043_v57  ;;  %v836_v24 = vadd.f32 %v1878_v51, %v820_v44  ;;  %v894_v3 = vmul.f32 %v1923_v62, %v882_v17  ;;  %v691_v0 = vpop.permute.xlu0 %690 }
 0x195   : > { %v2212_v53 = vrot.slane %v995_v18, %v2039_v56  ;;  %v973_v41 = vsel %vm972_vm6, %v1976_v31, %v2082_v45  ;;  %v944_v16 = vmul.f32 %v2191_v12, %v910_v28  ;;  %v981_v50 = vsel %vm972_vm6, %v2082_v45, %v1976_v31 }
 0x196   : > { %v945_v57 = vmul.f32 %v2194_v21, %v918_v10  ;;  %v2225_v62 = vrot.slane %v1053_v49, %v2039_v56  ;;  %v897_v15 = vadd.f32 %v893_v43, %v835_v47  ;;  %v1006_v38 = vmul.f32 %v2200_v19, %v973_v41 }
 0x197   : > { %v2125_v40 = vpop.permute.xlu1 %553  ;;  %v2231_v46 = vrot.slane %v1057_v23, %v2039_v56  ;;  %v898_v44 = vadd.f32 %v894_v3, %v836_v24  ;;  %v1007_v31 = vmul.f32 %v2212_v53, %v981_v50  ;;  %v700_v45 = vsel %vm698_vm10, %v2104_v11, %v691_v0 }
 0x198   : > { %v706_v17 = vsel %vm698_vm10, %v691_v0, %v2104_v11  ;;  %v956_v28 = vmul.f32 %v1925_v63, %v944_v16  ;;  %v957_v10 = vmul.f32 %v1925_v63, %v945_v57  ;;  %v1027_v47 = vpop.permute.xlu0 %1026  ;;  %v1018_v24 = vmul.f32 %v1931_v4, %v1006_v38 }
 0x199   : > { %v742_v3 = vmul.f32 %v2090_v58, %v706_v17  ;;  %v1019_v0 = vmul.f32 %v1931_v4, %v1007_v31  ;;  %vm1194_vm10 = vcmask 64512  }
 0x19a   : > { %v960_v41 = vadd.f32 %v956_v28, %v897_v15  ;;  %v961_v16 = vadd.f32 %v957_v10, %v898_v44 }
 0x19b   : > { %v2149_v39 = vpop.permute.xlu1 %624  ;;  %v754_v4 = vmul.f32 %v1868_v29, %v742_v3 }
 0x19c   : > { %v908_v15 = vpop.permute.xlu0 %907 }
 0x19f   : > { %v2172_v34 = vpop.permute.xlu1 %768 }
 0x1a3   : > { %v2188_v35 = vpop.permute.xlu1 %905 }
 0x1a4   : > { %v919_v17 = vsel %vm909_vm14, %v908_v15, %v2188_v35 }
 0x1a7   : > { %v546_v14 = vpop.permute.xlu1 %545 }
 0x1a8   : > { %v563_v51 = vsel %vm555_vm15, %v546_v14, %v2125_v40  ;;  %v557_v27 = vsel %vm555_vm15, %v2125_v40, %v546_v14  ;;  %vm1705_vm15 = vmmov 0  }
 0x1a9   : > { %v600_v49 = vmul.f32 %v2065_v32, %v563_v51  ;;  %v601_v43 = vmul.f32 %v2069_v36, %v557_v27  ;;  %v743_v32 = vmul.f32 %v2100_v13, %v700_v45  ;;  %v1023_v45 = vadd.f32 %v1019_v0, %v961_v16  ;;  %1527 = vmatprep.mubr.msk.f32.mxu1 %vm1705_vm15, %v2436_v25  ;;  %v1115_v25 = vld [vmem:[%s2402_s7] sm:$0xff] }
 0x1ab   : > { %v619_v18 = vpop.permute.xlu1 %618  ;;  %v614_v36 = vmul.f32 %v1860_v20, %v600_v49  ;;  %v615_v50 = vmul.f32 %v1860_v20, %v601_v43  ;;  %v755_v57 = vmul.f32 %v1868_v29, %v743_v32  ;;  %v911_v20 = vsel %vm909_vm14, %v2188_v35, %v908_v15 }
 0x1ac   : > { %v628_v40 = vsel %vm626_vm4, %v2149_v39, %v619_v18  ;;  %v634_v56 = vsel %vm626_vm4, %v619_v18, %v2149_v39 }
 0x1ad   : > { %v670_v23 = vmul.f32 %v2085_v48, %v634_v56  ;;  %v671_v11 = vmul.f32 %v2095_v9, %v628_v40  ;;  %v834_v56 = vmul.f32 %v1880_v52, %v1899_v60 }
 0x1af   : > { %v682_v39 = vmul.f32 %v1862_v22, %v670_v23  ;;  %v683_v63 = vmul.f32 %v1862_v22, %v671_v11  ;;  %v1029_v14 = vpop.permute.xlu1 %1028  ;;  %v1022_v22 = vadd.f32 %v1018_v24, %v960_v41 }
 0x1b0   : > { %v1035_v48 = vsel %vm1034_vm13, %v1027_v47, %v1029_v14  ;;  %v1043_v9 = vsel %vm1034_vm13, %v1029_v14, %v1027_v47 }
 0x1b1   : > { %v1068_v58 = vmul.f32 %v2225_v62, %v1035_v48  ;;  %v1069_v13 = vmul.f32 %v2231_v46, %v1043_v9  ;;  %v686_v51 = vadd.f32 %v682_v39, %v614_v36  ;;  %v687_v38 = vadd.f32 %v683_v63, %v615_v50  ;;  %v1031_v36 = vpop.permute.xlu0 %1030 }
 0x1b3   : > { %v1080_v27 = vmul.f32 %v1933_v5, %v1068_v58  ;;  %v1081_v44 = vmul.f32 %v1933_v5, %v1069_v13  ;;  %v763_v31 = vpop.permute.xlu1 %762  ;;  %v758_v10 = vadd.f32 %v754_v4, %v686_v51  ;;  %v759_v47 = vadd.f32 %v755_v57, %v687_v38  ;;  %v1088_v38 = vld [vmem:[%s2400_s5] sm:$0xff] }
 0x1b4   : > { %v772_v18 = vsel %vm770_vm1, %v2172_v34, %v763_v31  ;;  %v778_v29 = vsel %vm770_vm1, %v763_v31, %v2172_v34 }
 0x1b5   : > { %v805_v28 = vmul.f32 %v2112_v26, %v778_v29  ;;  %v806_v49 = vmul.f32 %v2120_v30, %v772_v18  ;;  %v2274_v40 = vadd.f32 %v1080_v27, %v1022_v22  ;;  %v2276_v5 = vadd.f32 %v1081_v44, %v1023_v45  ;;  %v1114_v18 = vld [vmem:[%s2401_s6] sm:$0xff] }
 0x1b6   : > { %v946_v26 = vmul.f32 %v2191_v12, %v911_v20  ;;  %v947_v30 = vmul.f32 %v2194_v21, %v919_v17  ;;  %v1190_v29 = vld [vmem:[%s2403_s8] sm:$0xff] }
 0x1b7   : > { %v817_v35 = vmul.f32 %v1870_v33, %v805_v28  ;;  %v818_v43 = vmul.f32 %v1870_v33, %v806_v49  ;;  %v846_v23 = vpop.permute.xlu1 %845  ;;  %v1104_v34 = vadd.f32 %v2276_v5, %v2274_v40 }
 0x1b8   : > { %v849_v11 = vsel %vm847_vm0, %v2144_v55, %v846_v23  ;;  %v857_v52 = vsel %vm847_vm0, %v846_v23, %v2144_v55  ;;  %v958_v39 = vmul.f32 %v1927_v1, %v946_v26  ;;  %v959_v63 = vmul.f32 %v1927_v1, %v947_v30 }
 0x1b9   : > { %v821_v60 = vadd.f32 %v817_v35, %v758_v10  ;;  %v822_v24 = vadd.f32 %v818_v43, %v759_v47  ;;  %v883_v3 = vmul.f32 %v2162_v37, %v849_v11  ;;  %v884_v33 = vmul.f32 %v2167_v42, %v857_v52  ;;  %1105 = vadd.xlane.f32.xlu0 %v1104_v34  ;;  %v1191_v47 = vld [vmem:[%s2403_s8 + $0x8] sm:$0xff]  ;;  %v1192_v43 = vld [vmem:[%s2404_s9] sm:$0xff] }
 0x1ba   : > { %v1193_v35 = vld [vmem:[%s2404_s9 + $0x8] sm:$0xff] }
 0x1bb   : > { %v837_v32 = vadd.f32 %v1883_v54, %v821_v60  ;;  %v838_v41 = vadd.f32 %v834_v56, %v822_v24  ;;  %v895_v12 = vmul.f32 %v1921_v61, %v883_v3  ;;  %v896_v21 = vmul.f32 %v1921_v61, %v884_v33  ;;  %v971_v0 = vpop.permute.xlu1 %970 }
 0x1bc   : > { %v974_v55 = vsel %vm972_vm6, %v2181_v59, %v971_v0  ;;  %v982_v37 = vsel %vm972_vm6, %v971_v0, %v2181_v59 }
 0x1bd   : > { %v899_v42 = vadd.f32 %v895_v12, %v837_v32  ;;  %v900_v14 = vadd.f32 %v896_v21, %v838_v41  ;;  %v1008_v54 = vmul.f32 %v2200_v19, %v974_v55  ;;  %v1009_v16 = vmul.f32 %v2212_v53, %v982_v37  ;;  %v1319_v12 = vld [vmem:[%s2406_s11] sm:$0xf] }
 0x1bf   : > { %v1020_v61 = vmul.f32 %v1929_v2, %v1008_v54  ;;  %v1021_v48 = vmul.f32 %v1929_v2, %v1009_v16  ;;  %v1033_v9 = vpop.permute.xlu1 %1032  ;;  %v962_v50 = vadd.f32 %v958_v39, %v899_v42  ;;  %v963_v1 = vadd.f32 %v959_v63, %v900_v14 }
 0x1c0   : > { %v1036_v58 = vsel %vm1034_vm13, %v1031_v36, %v1033_v9  ;;  %v1044_v13 = vsel %vm1034_vm13, %v1033_v9, %v1031_v36 }
 0x1c1   : > { %v1070_v59 = vmul.f32 %v2225_v62, %v1036_v58  ;;  %v1071_v4 = vmul.f32 %v2231_v46, %v1044_v13  ;;  %v1024_v57 = vadd.f32 %v1020_v61, %v962_v50  ;;  %v1025_v51 = vadd.f32 %v1021_v48, %v963_v1  ;;  %v1089_v62 = vld [vmem:[%s2400_s5 + $0x8] sm:$0xff] }
 0x1c2   : > { %v1704_v46 = vmov 0.0|0.0  }
 0x1c3   : > { %v1082_v19 = vmul.f32 %v1935_v8, %v1070_v59  ;;  %v1083_v53 = vmul.f32 %v1935_v8, %v1071_v4  ;;  %1535 = vmatprep.subr.bf16.mxu1 %v1704_v46 }
 0x1c5   : > { %v1086_v22 = vadd.f32 %v1082_v19, %v1024_v57  ;;  %v1087_v15 = vadd.f32 %v1083_v53, %v1025_v51 }
 0x1c7   : > { %v1107_v2 = vadd.f32 %v1087_v15, %v1086_v22 }
 0x1c9   : > { %1108 = vadd.xlane.f32.xlu1 %v1107_v2 }
 0x1cf   : > { %1092 = vperm.xlu0 %1619, %v1088_v38  }
 0x1da   : > { %1097 = vperm.xlu1 %1620, %v1089_v62  }
 0x246   : > { %v1106_v8 = vpop.xlane.xlu0 %1105 }
 0x247   : > { %v1110_v27 = vmul.f32 0.00390625, %v1106_v8 }
 0x249   : > { %v1112_v45 = vadd.f32 %v1110_v27, %v1088_v38 }
 0x24e   : > { %v1093_v21 = vpop.permute.xlu0 %1092 }
 0x24f   : > { %v1100_v39 = vadd.f32 %v1093_v21, %v2274_v40  ;;  %v1101_v63 = vadd.f32 %v1093_v21, %v2276_v5 }
 0x256   : > { %v1109_v44 = vpop.xlane.xlu1 %1108 }
 0x257   : > { %v1111_v31 = vmul.f32 0.00390625, %v1109_v44  ;;  %v1318_v44 = vld [vmem:[%s2405_s10] sm:$0xf] }
 0x259   : > { %v1113_v20 = vadd.f32 %v1111_v31, %v1089_v62 }
 0x25a   : > { %v1098_v0 = vpop.permute.xlu1 %1097 }
 0x25b   : > { %v1536_v17 = vpack.c.bf16 %v1113_v20, %v1112_v45  ;;  %v1102_v14 = vadd.f32 %v1098_v0, %v1086_v22  ;;  %v1103_v54 = vadd.f32 %v1098_v0, %v1087_v15 }
 0x25d   : > { %1537 = vmatpush3.bf16.msra.mxu1 %v1536_v17 }
 0x260   : > { %1528 = vmatmul.mubr.msk.f32.vlgmr.msra.gmra.mrb[0].mxu1 %vm626_vm4, %v1114_v18 }
 0x261   : > { %1532 = vmatprep.mubr.msk.f32.mxu1 %vm1194_vm10, %v1190_v29 }
 0x333   : > { %v1185_v28 = vpop.f32.mrb[0].mxu1 }
 0x334   : > { %v1186_v49 = vadd.f32 %v1185_v28, %v1115_v25  ;;  %v1529_v56 = vpop.f32.mrb[1].mxu1 }
 0x336   : > { %v1189_v10 = vmax.f32 %v1186_v49, 0.0 }
 0x338   : > { %1530 = vmatprep.subr.mxu1 %v1189_v10 }
 0x339   : > { %1531 = vmatpush3.msra.mxu1 %v1189_v10 }
 0x33a   : > { %1533 = vmatmul.mubr.msk.f32.vlgmr.msra.gmra.mrb[2].mxu1 %vm1194_vm10, %v1191_v47 }
 0x40d   : > { %v1534_v23 = vpop.f32.mrb[2].mxu1 }
 0x40e   : > { %v1273_v34 = vadd.f32 %v1534_v23, %v1193_v35  ;;  %v1267_v26 = vpop.f32.mrb[3].mxu1 }
 0x40f   : > { %v1268_v30 = vadd.f32 %v1267_v26, %v1192_v43 }
 0x410   : > { %v1277_v11 = vadd.f32 3.0, %v1273_v34 }
 0x411   : > { %v1276_v52 = vadd.f32 3.0, %v1268_v30 }
 0x412   : > { %v1279_v60 = vmax.f32 %v1277_v11, 0.0 }
 0x413   : > { %v1278_v24 = vmax.f32 %v1276_v52, 0.0 }
 0x414   : > { %v1281_v33 = vmin.f32 %v1279_v60, 6.0 }
 0x415   : > { %v1280_v3 = vmin.f32 %v1278_v24, 6.0 }
 0x416   : > { %v1283_v41 = vmul.f32 0.16666667, %v1281_v33 }
 0x417   : > { %v1282_v32 = vmul.f32 0.16666667, %v1280_v3 }
 0x419   : > { %1286 = vperm.xlu1 %1620, %v1282_v32  }
 0x41d   : > { %1291 = vperm.xlu1 %1620, %v1283_v41  }
 0x421   : > { %1322 = vperm.xlu1 %1620, %v1319_v12  }
 0x498   : > { %v1287_v55 = vpop.permute.xlu1 %1286 }
 0x499   : > { %v1294_v37 = vmul.f32 %v1287_v55, %v1100_v39  ;;  %v1295_v42 = vmul.f32 %v1287_v55, %v1101_v63 }
 0x49b   : > { %v1298_v16 = vadd.f32 3.0, %v1294_v37  ;;  %v1299_v36 = vadd.f32 3.0, %v1295_v42 }
 0x49c   : > { %v1292_v61 = vpop.permute.xlu1 %1291 }
 0x49d   : > { %v1302_v48 = vmax.f32 %v1298_v16, 0.0  ;;  %v1303_v9 = vmax.f32 %v1299_v36, 0.0  ;;  %v1296_v50 = vmul.f32 %v1292_v61, %v1102_v14  ;;  %v1297_v1 = vmul.f32 %v1292_v61, %v1103_v54 }
 0x49f   : > { %v1306_v58 = vmin.f32 %v1302_v48, 6.0  ;;  %v1307_v13 = vmin.f32 %v1303_v9, 6.0  ;;  %v1300_v59 = vadd.f32 3.0, %v1296_v50  ;;  %v1301_v4 = vadd.f32 3.0, %v1297_v1 }
 0x4a0   : > { %v1323_v31 = vpop.permute.xlu1 %1322 }
 0x4a1   : > { %v1304_v19 = vmax.f32 %v1300_v59, 0.0  ;;  %v1305_v40 = vmax.f32 %v1301_v4, 0.0  ;;  %v1310_v53 = vmul.f32 0.16666667, %v1306_v58  ;;  %v1311_v5 = vmul.f32 0.16666667, %v1307_v13 }
 0x4a3   : > { %v1308_v57 = vmin.f32 %v1304_v19, 6.0  ;;  %v1309_v51 = vmin.f32 %v1305_v40, 6.0  ;;  %v1314_v2 = vmul.f32 %v1310_v53, %v1294_v37  ;;  %v1315_v38 = vmul.f32 %v1311_v5, %v1295_v42 }
 0x4a5   : > { %v1312_v22 = vmul.f32 0.16666667, %v1308_v57  ;;  %v1313_v15 = vmul.f32 0.16666667, %v1309_v51 }
 0x4a7   : > { %v1316_v62 = vmul.f32 %v1312_v22, %v1296_v50  ;;  %v1317_v46 = vmul.f32 %v1313_v15, %v1297_v1 }
 0x4a9   : > { %v1540_v8 = vpack.c.bf16 %v1316_v62, %v1314_v2  ;;  %v1538_v27 = vpack.c.bf16 %v1317_v46, %v1315_v38 }
 0x4ab   : > { %1539 = vmatprep.subr.bf16.mxu0 %v1538_v27 }
 0x4ac   : > { %1541 = vmatpush1.bf16.msra.mxu0 %v1540_v8 }
 0x4af   : > { %1509 = vmatmul.mubr.msk.f32.vlgmr.msra.gmra.mrb[4].mxu0 %vm626_vm4, %v1318_v44 }
 0x582   : > { %v1394_v45 = vpop.f32.mrb[4].mxu0 }
 0x583   : > { %v1395_v20 = vadd.f32 %v1394_v45, %v1323_v31  ;;  %v1396_v17 = vpop.f32.mrb[5].mxu0 }
 0x584   : > { %v1397_v18 = vadd.f32 %v1396_v17, %v1323_v31 }
 0x585   : > { %v1400_v29 = vadd.f32 %v1395_v20, %v1840_v6 }
 0x586   : > { %v1401_v25 = vadd.f32 %v1397_v18, %v1844_v7 }
 0x588   : > { %v1404_v28 = vcombine.low %v1400_v29, %v1401_v25 }
 0x58a   : > { %1406 = vst [vmem:[%s406_s26] sm:$0xff] %v1404_v28 }
 0x58b   : > { %1635 = shalt.err (!%p1632_p3)
}
 0x58c   : > { %s1636_s17 = scalar_lea.hbm %s2353_s15, 128  ;;  %s1640_s28 = scalar_lea.hbm %s2407_s12, 256 }
 0x58d   : > { %p1637_p4 = scmp.ne.s32.totalorder %s2353_s15, %s1636_s17  ;;  %p1641_p9 = scmp.lt.u32.totalorder %s2353_s15, %s2407_s12 }
 0x58e   : > { %p1642_p10 = scmp.lt.u32.totalorder %s1640_s28, %s1636_s17  ;;  %p1644_p12 = scmp.lt.u32.totalorder %s1636_s17, %s2353_s15 }
 0x58f   : > { %p1638_p7 = pnand %p1637_p4, %p1810_p5 }
 0x590   : > { %p1643_p11 = por %p1642_p10, %p1641_p9 }
 0x591   : > { %p1639_p8 = pneg %p1638_p7 }
 0x592   : > { %p1645_p13 = por %p1644_p12, %p1643_p11 }
 0x594   : > { %p1646_p0 = pnand %p1645_p13, %p1639_p8 }
 0x596   : > { %1649 = shalt.err (!%p1646_p0)
}
 0x597   : > { %1542 = dma.vmem_to_hbm [thread:$0]  (%p1810_p5), %s2355_s20, 128, %s2353_s15, %s1408_s16  }
 0x598 PF: > { %p1548_p1 = scmp.ge.s32.totalorder %s1684_s24, 2  ;;  %s1434_s0 = sand.u32 1, %s1672_s21  }
 0x599   : > { %s1435_s1 = scalar_lea.sflag [#allocation3], %s1434_s0 }
 0x59a   : > { %p1545_p2 = pnand %p1548_p1, %p1814_p6 }
 0x59c   : > { %1667 = dma.done.wait (!%p1545_p2), %s1435_s1, 128  }
 0x59d   : > { %1669 = vsyncadd (!%p1545_p2), %s1435_s1, 4294967168  ;;  %p22_p3 = scmp.ge.s32.totalorder %s1797_s27, 4   ;;  %s2437_s21 = smov %s1676_s22 }
 0x59e   : > { %s2438_s22 = smov %s1680_s23  ;;  %s2439_s23 = smov %s1808_s30 }
 0x59f   : > { %s2440_s24 = smov %s1797_s27  ;;  %24 = sbr.rel (!%p22_p3) target bundleno = 6 (0x6), region = 103 }
 0x5a6   :  { %1440 = vsyncpa [#allocation3], 1 }
 0x5a7   :  { %1442 = vsyncpa [#allocation3 + $0x1], 1 }

</bundles_post_ra>
